<compile_context>
chip_gen: v7x
topology: tpu7x:2x2x1
jax: 0.10.0
libtpu: 0.0.40
codegen_flags: <defaults>
</compile_context>

<pallas_src>
import jax
import jax.numpy as jnp
import numpy as np
from jax.experimental import pallas as pl
from jax.experimental.pallas import tpu as pltpu

# ------------------------- small, module-consistent shapes -------------------
T = 8               # n_words (incl. ROOT at position 0)
W_EMB = 16          # w_emb_dim
P_EMB = 16          # pos_emb_dim
D_IN = W_EMB + P_EMB
H = 32              # lstm_hid_dim
M = 32              # mlp_hid_dim
R = 8               # n_arc_relations
VOCAB = 50
N_POS = 12
V2 = VOCAB + N_POS


def _vmem():
    # whole-array block resident in VMEM (everything here is a few KiB)
    return pl.BlockSpec(memory_space=pltpu.MemorySpace.VMEM)


# ------------------------------ fused kernel ---------------------------------
def bist_fused_kernel(widx_ref, pidx_ref, gold_ref, emb_ref,
                      wih_all_ref, b_all_ref, whh_bd_ref,
                      w_mlp_ref, arc_bias_ref, w_arc_out_ref,
                      rel_bias_ref, w_rel_out_ref, b_rel_out_ref,
                      arc_out_ref, rel_out_ref):
    f32 = jnp.float32

    # ---- embeddings: two-hot @ block-diag table, ONE MXU push (exact gather +
    # concat in one op; each output element has exactly one nonzero term). ----
    ids = jax.lax.broadcasted_iota(jnp.int32, (T, V2), 1)
    two_hot = jnp.logical_or(widx_ref[...] == ids,
                             (pidx_ref[...] + VOCAB) == ids).astype(f32)
    x = jnp.dot(two_hot, emb_ref[...], preferred_element_type=f32)       # [T, D_IN]

    # ---- hoisted input projection, both directions in ONE matmul ------------
    # columns [0:4H] = forward gates, [4H:8H] = backward gates; bias folded in.
    xw = jnp.dot(x, wih_all_ref[...], preferred_element_type=f32) + b_all_ref[...]

    whh_bd = whh_bd_ref[...]                                             # [2H, 8H]

    def cell(gates, c):
        i_g = jax.nn.sigmoid(gates[:, 0 * H:1 * H])
        f_g = jax.nn.sigmoid(gates[:, 1 * H:2 * H])
        g_g = jnp.tanh(gates[:, 2 * H:3 * H])
        o_g = jax.nn.sigmoid(gates[:, 3 * H:4 * H])
        c_new = f_g * c + i_g * g_g
        return o_g * jnp.tanh(c_new), c_new

    # Interleave fwd step t and bwd step T-1-t; the block-diagonal weight makes
    # the two recurrent matmuls ONE [1,2H] x [2H,8H] push per step.
    h_cat = jnp.zeros((1, 2 * H), f32)       # [h_f | h_b]
    c_f = jnp.zeros((1, H), f32)
    c_b = jnp.zeros((1, H), f32)
    fwd_h = [None] * T
    bwd_h = [None] * T
    for t in range(T):                       # static unroll (T=8 serial steps)
        rt = T - 1 - t
        hh = jnp.dot(h_cat, whh_bd, preferred_element_type=f32)          # [1, 8H]
        g_f = xw[t:t + 1, 0:4 * H] + hh[:, 0:4 * H]
        g_b = xw[rt:rt + 1, 4 * H:8 * H] + hh[:, 4 * H:8 * H]
        h_f, c_f = cell(g_f, c_f)
        h_b, c_b = cell(g_b, c_b)
        fwd_h[t] = h_f
        bwd_h[rt] = h_b
        h_cat = jnp.concatenate([h_f, h_b], axis=1)
    # Build hidden once as a value (no per-step partial stores, never leaves VMEM).
    hidden = jnp.concatenate(
        [jnp.concatenate(fwd_h, axis=0), jnp.concatenate(bwd_h, axis=0)],
        axis=1)                                                          # [T, 2H]

    # ---- all four MLP projections in ONE matmul ------------------------------
    mlp = jnp.dot(hidden, w_mlp_ref[...], preferred_element_type=f32)    # [T, 4M]
    ah = mlp[:, 0 * M:1 * M]
    am = mlp[:, 1 * M:2 * M]
    rel_h_all = mlp[:, 2 * M:3 * M]
    rel_m_all = mlp[:, 3 * M:4 * M]

    # ---- arc scores: arc[i, j] = w . tanh(ah[i] + am[j] + b) ------------------
    # Build the full [T*T, M] slab (modifier-major) and contract with w in ONE
    # MXU push; then reassemble [T, T] from the vreg-aligned row chunks.
    t_all = jnp.tanh(
        jnp.concatenate([ah + am[j:j + 1, :] for j in range(T)], axis=0)
        + arc_bias_ref[...])                                             # [T*T, M]
    arc_flat = jnp.dot(t_all, w_arc_out_ref[...],
                       preferred_element_type=f32)                       # [T*T, 1]
    arc_out_ref[...] = jnp.concatenate(
        [arc_flat[j * T:(j + 1) * T, :] for j in range(T)], axis=1)      # [T, T]

    # ---- relation scores: head gather AFTER projection (smaller gather) ------
    heads = gold_ref[...][1:, :]                                         # [T-1, 1]
    head_oh = (heads ==
               jax.lax.broadcasted_iota(jnp.int32, (T - 1, T), 1)).astype(f32)
    rh = jnp.dot(head_oh, rel_h_all, preferred_element_type=f32)         # [T-1, M]
    rm = rel_m_all[1:, :]                                                # [T-1, M]
    t_r = jnp.tanh(rh + rm + rel_bias_ref[...])
    rel_out_ref[...] = (jnp.dot(t_r, w_rel_out_ref[...],
                                preferred_element_type=f32)
                        + b_rel_out_ref[...])                            # [T-1, R]


# ------------------------------ forward wrapper -------------------------------
def bist_forward(params, word_idx, pos_idx, gold_tree):
    f32 = jnp.float32
    widx = word_idx.astype(jnp.int32).reshape(T, 1)
    pidx = pos_idx.astype(jnp.int32).reshape(T, 1)
    gold = gold_tree.astype(jnp.int32).reshape(T, 1)

    # Parameter reorganization (tiny, parameter-only concats/pads) so the kernel
    # needs one matmul per stage: block-diag embedding table, fused input
    # projection, block-diag recurrent weight, fused MLP projection.
    emb_tab = jnp.concatenate([
        jnp.concatenate([params['word_emb'],
                         jnp.zeros((VOCAB, P_EMB), f32)], axis=1),
        jnp.concatenate([jnp.zeros((N_POS, W_EMB), f32),
                         params['pos_emb']], axis=1)], axis=0)           # [V2, D_IN]
    wih_all = jnp.concatenate([params['wih_f'], params['wih_b']], axis=1)  # [D_IN, 8H]
    b_all = jnp.concatenate([params['b_f'], params['b_b']], axis=1)        # [1, 8H]
    zH = jnp.zeros((H, 4 * H), f32)
    whh_bd = jnp.concatenate([
        jnp.concatenate([params['whh_f'], zH], axis=1),
        jnp.concatenate([zH, params['whh_b']], axis=1)], axis=0)           # [2H, 8H]
    w_mlp = jnp.concatenate([params['w_arc_h'], params['w_arc_m'],
                             params['w_rel_h'], params['w_rel_m']], axis=1)  # [2H, 4M]

    arc_scores, rel_scores = pl.pallas_call(
        bist_fused_kernel,
        out_shape=(jax.ShapeDtypeStruct((T, T), jnp.float32),
                   jax.ShapeDtypeStruct((T - 1, R), jnp.float32)),
        in_specs=[_vmem()] * 13,
        out_specs=(_vmem(), _vmem()),
    )(widx, pidx, gold, emb_tab, wih_all, b_all, whh_bd,
      w_mlp, params['arc_bias'], params['w_arc_out'],
      params['rel_bias'], params['w_rel_out'], params['b_rel_out'])

    # TODO(synk): parse_proj (host-side Eisner DP over arc_scores) omitted;
    # heads come from gold_tree (the training code path), already in-kernel.
    return arc_scores, rel_scores


# --------------------------- deterministic params -----------------------------
def make_params(key):
    def xavier(k, shape):
        bound = float(np.sqrt(6.0 / (shape[0] + shape[1])))
        return jax.random.uniform(k, shape, jnp.float32, -bound, bound)

    def emb(k, shape):
        bound = float(np.sqrt(3.0 / shape[1]))
        return jax.random.uniform(k, shape, jnp.float32, -bound, bound)

    ks = jax.random.split(key, 16)
    # LSTM biases follow the module's init: b_ih + b_hh -> [0]*H, [1]*H, [0]*2H
    lstm_bias = jnp.concatenate(
        [jnp.zeros((1, H)), jnp.ones((1, H)), jnp.zeros((1, 2 * H))],
        axis=-1).astype(jnp.float32)
    return {
        'word_emb': emb(ks[0], (VOCAB, W_EMB)),
        'pos_emb': emb(ks[1], (N_POS, P_EMB)),
        'wih_f': xavier(ks[2], (D_IN, 4 * H)),
        'whh_f': xavier(ks[3], (H, 4 * H)),
        'b_f': lstm_bias,
        'wih_b': xavier(ks[4], (D_IN, 4 * H)),
        'whh_b': xavier(ks[5], (H, 4 * H)),
        'b_b': lstm_bias,
        'w_arc_h': xavier(ks[6], (2 * H, M)),
        'w_arc_m': xavier(ks[7], (2 * H, M)),
        'arc_bias': jax.random.uniform(ks[8], (1, M), jnp.float32,
                                       -float(np.sqrt(3.0 / M)),
                                       float(np.sqrt(3.0 / M))),
        'w_arc_out': xavier(ks[9], (M, 1)),          # Linear(M, 1, bias=False).T
        'w_rel_h': xavier(ks[10], (2 * H, M)),
        'w_rel_m': xavier(ks[11], (2 * H, M)),
        'rel_bias': jax.random.uniform(ks[12], (1, M), jnp.float32,
                                       -float(np.sqrt(3.0 / M)),
                                       float(np.sqrt(3.0 / M))),
        'w_rel_out': xavier(ks[13], (M, R)),
        'b_rel_out': jax.random.uniform(ks[14], (1, R), jnp.float32,
                                        -float(np.sqrt(3.0 / R)),
                                        float(np.sqrt(3.0 / R))),
    }


# ------------------------------ numpy reference --------------------------------
def numpy_reference(params, word_idx, pos_idx, gold_tree):
    p = {k: np.asarray(v, dtype=np.float64) for k, v in params.items()}
    x = np.concatenate([p['word_emb'][np.asarray(word_idx)],
                        p['pos_emb'][np.asarray(pos_idx)]], axis=-1)

    def sigmoid(z):
        return 1.0 / (1.0 + np.exp(-z))

    def run_dir(wih, whh, b, reverse):
        h = np.zeros((1, H)); c = np.zeros((1, H)); out = np.zeros((T, H))
        order = range(T - 1, -1, -1) if reverse else range(T)
        for t in order:
            g = x[t:t + 1] @ wih + h @ whh + b
            i_g = sigmoid(g[:, :H]); f_g = sigmoid(g[:, H:2 * H])
            g_g = np.tanh(g[:, 2 * H:3 * H]); o_g = sigmoid(g[:, 3 * H:])
            c = f_g * c + i_g * g_g
            h = o_g * np.tanh(c)
            out[t] = h[0]
        return out

    hidden = np.concatenate([run_dir(p['wih_f'], p['whh_f'], p['b_f'], False),
                             run_dir(p['wih_b'], p['whh_b'], p['b_b'], True)],
                            axis=-1)
    ah = hidden @ p['w_arc_h']; am = hidden @ p['w_arc_m']
    th = np.tanh(ah[:, None, :] + am[None, :, :] + p['arc_bias'][None, :, :])
    arc = (th.reshape(T * T, M) @ p['w_arc_out']).reshape(T, T)
    heads = np.asarray(gold_tree)[1:]
    rh = hidden[heads] @ p['w_rel_h']; rm = hidden[1:] @ p['w_rel_m']
    rel = np.tanh(rh + rm + p['rel_bias']) @ p['w_rel_out'] + p['b_rel_out']
    return arc, rel


# ----------------------------------- main --------------------------------------
if __name__ == "__main__":
    key = jax.random.PRNGKey(0)
    k_params, k_words, k_pos = jax.random.split(key, 3)

    params = make_params(k_params)
    word_idx = jax.random.randint(k_words, (T,), 0, VOCAB, dtype=jnp.int32)
    pos_idx = jax.random.randint(k_pos, (T,), 0, N_POS, dtype=jnp.int32)
    # gold_tree[0] is ROOT's (unused) head; heads of tokens 1..T-1 follow.
    gold_tree = jnp.array([0, 0, 1, 1, 0, 3, 4, 0], dtype=jnp.int32)

    arc_scores, rel_scores = jax.jit(bist_forward)(params, word_idx, pos_idx,
                                                   gold_tree)
    jax.block_until_ready((arc_scores, rel_scores))

    arc_ref, rel_ref = numpy_reference(params, word_idx, pos_idx, gold_tree)
    assert arc_scores.shape == (T, T) and rel_scores.shape == (T - 1, R)
    assert np.all(np.isfinite(np.asarray(arc_scores)))
    assert np.all(np.isfinite(np.asarray(rel_scores)))
    np.testing.assert_allclose(np.asarray(arc_scores), arc_ref,
                               rtol=1e-4, atol=1e-4)
    np.testing.assert_allclose(np.asarray(rel_scores), rel_ref,
                               rtol=1e-4, atol=1e-4)
    print("KERNEL_OK")
</pallas_src>

<mosaic_0001>
module attributes {stable_mosaic.version = 11 : i64} {
  func.func @bist_fused_kernel(%arg0: memref<8x1xi32, #tpu.memory_space<vmem>>, %arg1: memref<8x1xi32, #tpu.memory_space<vmem>>, %arg2: memref<8x1xi32, #tpu.memory_space<vmem>>, %arg3: memref<62x32xf32, #tpu.memory_space<vmem>>, %arg4: memref<32x256xf32, #tpu.memory_space<vmem>>, %arg5: memref<1x256xf32, #tpu.memory_space<vmem>>, %arg6: memref<64x256xf32, #tpu.memory_space<vmem>>, %arg7: memref<64x128xf32, #tpu.memory_space<vmem>>, %arg8: memref<1x32xf32, #tpu.memory_space<vmem>>, %arg9: memref<32x1xf32, #tpu.memory_space<vmem>>, %arg10: memref<1x32xf32, #tpu.memory_space<vmem>>, %arg11: memref<32x8xf32, #tpu.memory_space<vmem>>, %arg12: memref<1x8xf32, #tpu.memory_space<vmem>>, %arg13: memref<8x8xf32, #tpu.memory_space<vmem>>, %arg14: memref<7x8xf32, #tpu.memory_space<vmem>>) attributes {dimension_semantics = [], scalar_prefetch = 0 : i64, scratch_operands = 0 : i64, tpu.core_type = #tpu.core_type<tc>} {
    %0 = tpu.iota {dimensions = array<i32: 1>} : vector<8x62xi32>
    %c0 = arith.constant 0 : index
    %c0_0 = arith.constant 0 : index
    %1 = vector.load %arg0[%c0, %c0_0] : memref<8x1xi32, #tpu.memory_space<vmem>>, vector<8x1xi32>
    %2 = vector.broadcast %1 : vector<8x1xi32> to vector<8x62xi32>
    %3 = arith.cmpi eq, %2, %0 : vector<8x62xi32>
    %c0_1 = arith.constant 0 : index
    %c0_2 = arith.constant 0 : index
    %4 = vector.load %arg1[%c0_1, %c0_2] : memref<8x1xi32, #tpu.memory_space<vmem>>, vector<8x1xi32>
    %c50_i32 = arith.constant 50 : i32
    %5 = vector.broadcast %c50_i32 : i32 to vector<8x1xi32>
    %6 = arith.addi %4, %5 : vector<8x1xi32>
    %7 = vector.broadcast %6 : vector<8x1xi32> to vector<8x62xi32>
    %8 = arith.cmpi eq, %7, %0 : vector<8x62xi32>
    %9 = arith.ori %3, %8 : vector<8x62xi1>
    %10 = arith.extui %9 : vector<8x62xi1> to vector<8x62xi32>
    %11 = arith.sitofp %10 : vector<8x62xi32> to vector<8x62xf32>
    %c0_3 = arith.constant 0 : index
    %c0_4 = arith.constant 0 : index
    %12 = vector.load %arg3[%c0_3, %c0_4] : memref<62x32xf32, #tpu.memory_space<vmem>>, vector<62x32xf32>
    %cst = arith.constant dense<0.000000e+00> : vector<8x32xf32>
    %13 = tpu.matmul %11, %12, %cst {dimension_numbers = #tpu.dot_dimension_numbers<[1], [0], [0], [1], [0, 0, 1, 1], [], []>} : vector<8x62xf32>, vector<62x32xf32>, vector<8x32xf32> -> vector<8x32xf32>
    %c0_5 = arith.constant 0 : index
    %c0_6 = arith.constant 0 : index
    %14 = vector.load %arg4[%c0_5, %c0_6] : memref<32x256xf32, #tpu.memory_space<vmem>>, vector<32x256xf32>
    %cst_7 = arith.constant dense<0.000000e+00> : vector<8x256xf32>
    %15 = tpu.matmul %13, %14, %cst_7 {dimension_numbers = #tpu.dot_dimension_numbers<[1], [0], [0], [1], [0, 0, 1, 1], [], []>} : vector<8x32xf32>, vector<32x256xf32>, vector<8x256xf32> -> vector<8x256xf32>
    %c0_8 = arith.constant 0 : index
    %c0_9 = arith.constant 0 : index
    %16 = vector.load %arg5[%c0_8, %c0_9] : memref<1x256xf32, #tpu.memory_space<vmem>>, vector<1x256xf32>
    %17 = vector.broadcast %16 : vector<1x256xf32> to vector<8x256xf32>
    %18 = arith.addf %15, %17 : vector<8x256xf32>
    %c0_10 = arith.constant 0 : index
    %c0_11 = arith.constant 0 : index
    %19 = vector.load %arg6[%c0_10, %c0_11] : memref<64x256xf32, #tpu.memory_space<vmem>>, vector<64x256xf32>
    %cst_12 = arith.constant 0.000000e+00 : f32
    %20 = vector.broadcast %cst_12 : f32 to vector<1x64xf32>
    %cst_13 = arith.constant 0.000000e+00 : f32
    %21 = vector.broadcast %cst_13 : f32 to vector<1x32xf32>
    %cst_14 = arith.constant 0.000000e+00 : f32
    %22 = vector.broadcast %cst_14 : f32 to vector<1x32xf32>
    %cst_15 = arith.constant dense<0.000000e+00> : vector<1x256xf32>
    %23 = tpu.matmul %20, %19, %cst_15 {dimension_numbers = #tpu.dot_dimension_numbers<[1], [0], [0], [1], [0, 0, 1, 1], [], []>} : vector<1x64xf32>, vector<64x256xf32>, vector<1x256xf32> -> vector<1x256xf32>
    %24 = vector.extract_strided_slice %18 {offsets = [0, 0], sizes = [1, 128], strides = [1, 1]} : vector<8x256xf32> to vector<1x128xf32>
    %25 = vector.extract_strided_slice %23 {offsets = [0, 0], sizes = [1, 128], strides = [1, 1]} : vector<1x256xf32> to vector<1x128xf32>
    %26 = arith.addf %24, %25 : vector<1x128xf32>
    %27 = vector.extract_strided_slice %18 {offsets = [7, 128], sizes = [1, 128], strides = [1, 1]} : vector<8x256xf32> to vector<1x128xf32>
    %28 = vector.extract_strided_slice %23 {offsets = [0, 128], sizes = [1, 128], strides = [1, 1]} : vector<1x256xf32> to vector<1x128xf32>
    %29 = arith.addf %27, %28 : vector<1x128xf32>
    %30 = vector.extract_strided_slice %26 {offsets = [0, 0], sizes = [1, 32], strides = [1, 1]} : vector<1x128xf32> to vector<1x32xf32>
    %31 = arith.negf %30 : vector<1x32xf32>
    %32 = math.exp %31 : vector<1x32xf32>
    %cst_16 = arith.constant 1.000000e+00 : f32
    %33 = vector.broadcast %cst_16 : f32 to vector<1x32xf32>
    %34 = arith.addf %33, %32 : vector<1x32xf32>
    %35 = arith.divf %33, %34 : vector<1x32xf32>
    %36 = vector.extract_strided_slice %26 {offsets = [0, 32], sizes = [1, 32], strides = [1, 1]} : vector<1x128xf32> to vector<1x32xf32>
    %37 = arith.negf %36 : vector<1x32xf32>
    %38 = math.exp %37 : vector<1x32xf32>
    %cst_17 = arith.constant 1.000000e+00 : f32
    %39 = vector.broadcast %cst_17 : f32 to vector<1x32xf32>
    %40 = arith.addf %39, %38 : vector<1x32xf32>
    %41 = arith.divf %39, %40 : vector<1x32xf32>
    %42 = vector.extract_strided_slice %26 {offsets = [0, 64], sizes = [1, 32], strides = [1, 1]} : vector<1x128xf32> to vector<1x32xf32>
    %43 = math.tanh %42 : vector<1x32xf32>
    %44 = vector.extract_strided_slice %26 {offsets = [0, 96], sizes = [1, 32], strides = [1, 1]} : vector<1x128xf32> to vector<1x32xf32>
    %45 = arith.negf %44 : vector<1x32xf32>
    %46 = math.exp %45 : vector<1x32xf32>
    %cst_18 = arith.constant 1.000000e+00 : f32
    %47 = vector.broadcast %cst_18 : f32 to vector<1x32xf32>
    %48 = arith.addf %47, %46 : vector<1x32xf32>
    %49 = arith.divf %47, %48 : vector<1x32xf32>
    %50 = arith.mulf %41, %21 : vector<1x32xf32>
    %51 = arith.mulf %35, %43 : vector<1x32xf32>
    %52 = arith.addf %50, %51 : vector<1x32xf32>
    %53 = math.tanh %52 : vector<1x32xf32>
    %54 = arith.mulf %49, %53 : vector<1x32xf32>
    %55 = vector.extract_strided_slice %29 {offsets = [0, 0], sizes = [1, 32], strides = [1, 1]} : vector<1x128xf32> to vector<1x32xf32>
    %56 = arith.negf %55 : vector<1x32xf32>
    %57 = math.exp %56 : vector<1x32xf32>
    %cst_19 = arith.constant 1.000000e+00 : f32
    %58 = vector.broadcast %cst_19 : f32 to vector<1x32xf32>
    %59 = arith.addf %58, %57 : vector<1x32xf32>
    %60 = arith.divf %58, %59 : vector<1x32xf32>
    %61 = vector.extract_strided_slice %29 {offsets = [0, 32], sizes = [1, 32], strides = [1, 1]} : vector<1x128xf32> to vector<1x32xf32>
    %62 = arith.negf %61 : vector<1x32xf32>
    %63 = math.exp %62 : vector<1x32xf32>
    %cst_20 = arith.constant 1.000000e+00 : f32
    %64 = vector.broadcast %cst_20 : f32 to vector<1x32xf32>
    %65 = arith.addf %64, %63 : vector<1x32xf32>
    %66 = arith.divf %64, %65 : vector<1x32xf32>
    %67 = vector.extract_strided_slice %29 {offsets = [0, 64], sizes = [1, 32], strides = [1, 1]} : vector<1x128xf32> to vector<1x32xf32>
    %68 = math.tanh %67 : vector<1x32xf32>
    %69 = vector.extract_strided_slice %29 {offsets = [0, 96], sizes = [1, 32], strides = [1, 1]} : vector<1x128xf32> to vector<1x32xf32>
    %70 = arith.negf %69 : vector<1x32xf32>
    %71 = math.exp %70 : vector<1x32xf32>
    %cst_21 = arith.constant 1.000000e+00 : f32
    %72 = vector.broadcast %cst_21 : f32 to vector<1x32xf32>
    %73 = arith.addf %72, %71 : vector<1x32xf32>
    %74 = arith.divf %72, %73 : vector<1x32xf32>
    %75 = arith.mulf %66, %22 : vector<1x32xf32>
    %76 = arith.mulf %60, %68 : vector<1x32xf32>
    %77 = arith.addf %75, %76 : vector<1x32xf32>
    %78 = math.tanh %77 : vector<1x32xf32>
    %79 = arith.mulf %74, %78 : vector<1x32xf32>
    %80 = tpu.concatenate %54, %79 in 1 : vector<1x32xf32>, vector<1x32xf32> -> vector<1x64xf32>
    %cst_22 = arith.constant dense<0.000000e+00> : vector<1x256xf32>
    %81 = tpu.matmul %80, %19, %cst_22 {dimension_numbers = #tpu.dot_dimension_numbers<[1], [0], [0], [1], [0, 0, 1, 1], [], []>} : vector<1x64xf32>, vector<64x256xf32>, vector<1x256xf32> -> vector<1x256xf32>
    %82 = vector.extract_strided_slice %18 {offsets = [1, 0], sizes = [1, 128], strides = [1, 1]} : vector<8x256xf32> to vector<1x128xf32>
    %83 = vector.extract_strided_slice %81 {offsets = [0, 0], sizes = [1, 128], strides = [1, 1]} : vector<1x256xf32> to vector<1x128xf32>
    %84 = arith.addf %82, %83 : vector<1x128xf32>
    %85 = vector.extract_strided_slice %18 {offsets = [6, 128], sizes = [1, 128], strides = [1, 1]} : vector<8x256xf32> to vector<1x128xf32>
    %86 = vector.extract_strided_slice %81 {offsets = [0, 128], sizes = [1, 128], strides = [1, 1]} : vector<1x256xf32> to vector<1x128xf32>
    %87 = arith.addf %85, %86 : vector<1x128xf32>
    %88 = vector.extract_strided_slice %84 {offsets = [0, 0], sizes = [1, 32], strides = [1, 1]} : vector<1x128xf32> to vector<1x32xf32>
    %89 = arith.negf %88 : vector<1x32xf32>
    %90 = math.exp %89 : vector<1x32xf32>
    %cst_23 = arith.constant 1.000000e+00 : f32
    %91 = vector.broadcast %cst_23 : f32 to vector<1x32xf32>
    %92 = arith.addf %91, %90 : vector<1x32xf32>
    %93 = arith.divf %91, %92 : vector<1x32xf32>
    %94 = vector.extract_strided_slice %84 {offsets = [0, 32], sizes = [1, 32], strides = [1, 1]} : vector<1x128xf32> to vector<1x32xf32>
    %95 = arith.negf %94 : vector<1x32xf32>
    %96 = math.exp %95 : vector<1x32xf32>
    %cst_24 = arith.constant 1.000000e+00 : f32
    %97 = vector.broadcast %cst_24 : f32 to vector<1x32xf32>
    %98 = arith.addf %97, %96 : vector<1x32xf32>
    %99 = arith.divf %97, %98 : vector<1x32xf32>
    %100 = vector.extract_strided_slice %84 {offsets = [0, 64], sizes = [1, 32], strides = [1, 1]} : vector<1x128xf32> to vector<1x32xf32>
    %101 = math.tanh %100 : vector<1x32xf32>
    %102 = vector.extract_strided_slice %84 {offsets = [0, 96], sizes = [1, 32], strides = [1, 1]} : vector<1x128xf32> to vector<1x32xf32>
    %103 = arith.negf %102 : vector<1x32xf32>
    %104 = math.exp %103 : vector<1x32xf32>
    %cst_25 = arith.constant 1.000000e+00 : f32
    %105 = vector.broadcast %cst_25 : f32 to vector<1x32xf32>
    %106 = arith.addf %105, %104 : vector<1x32xf32>
    %107 = arith.divf %105, %106 : vector<1x32xf32>
    %108 = arith.mulf %99, %52 : vector<1x32xf32>
    %109 = arith.mulf %93, %101 : vector<1x32xf32>
    %110 = arith.addf %108, %109 : vector<1x32xf32>
    %111 = math.tanh %110 : vector<1x32xf32>
    %112 = arith.mulf %107, %111 : vector<1x32xf32>
    %113 = vector.extract_strided_slice %87 {offsets = [0, 0], sizes = [1, 32], strides = [1, 1]} : vector<1x128xf32> to vector<1x32xf32>
    %114 = arith.negf %113 : vector<1x32xf32>
    %115 = math.exp %114 : vector<1x32xf32>
    %cst_26 = arith.constant 1.000000e+00 : f32
    %116 = vector.broadcast %cst_26 : f32 to vector<1x32xf32>
    %117 = arith.addf %116, %115 : vector<1x32xf32>
    %118 = arith.divf %116, %117 : vector<1x32xf32>
    %119 = vector.extract_strided_slice %87 {offsets = [0, 32], sizes = [1, 32], strides = [1, 1]} : vector<1x128xf32> to vector<1x32xf32>
    %120 = arith.negf %119 : vector<1x32xf32>
    %121 = math.exp %120 : vector<1x32xf32>
    %cst_27 = arith.constant 1.000000e+00 : f32
    %122 = vector.broadcast %cst_27 : f32 to vector<1x32xf32>
    %123 = arith.addf %122, %121 : vector<1x32xf32>
    %124 = arith.divf %122, %123 : vector<1x32xf32>
    %125 = vector.extract_strided_slice %87 {offsets = [0, 64], sizes = [1, 32], strides = [1, 1]} : vector<1x128xf32> to vector<1x32xf32>
    %126 = math.tanh %125 : vector<1x32xf32>
    %127 = vector.extract_strided_slice %87 {offsets = [0, 96], sizes = [1, 32], strides = [1, 1]} : vector<1x128xf32> to vector<1x32xf32>
    %128 = arith.negf %127 : vector<1x32xf32>
    %129 = math.exp %128 : vector<1x32xf32>
    %cst_28 = arith.constant 1.000000e+00 : f32
    %130 = vector.broadcast %cst_28 : f32 to vector<1x32xf32>
    %131 = arith.addf %130, %129 : vector<1x32xf32>
    %132 = arith.divf %130, %131 : vector<1x32xf32>
    %133 = arith.mulf %124, %77 : vector<1x32xf32>
    %134 = arith.mulf %118, %126 : vector<1x32xf32>
    %135 = arith.addf %133, %134 : vector<1x32xf32>
    %136 = math.tanh %135 : vector<1x32xf32>
    %137 = arith.mulf %132, %136 : vector<1x32xf32>
    %138 = tpu.concatenate %112, %137 in 1 : vector<1x32xf32>, vector<1x32xf32> -> vector<1x64xf32>
    %cst_29 = arith.constant dense<0.000000e+00> : vector<1x256xf32>
    %139 = tpu.matmul %138, %19, %cst_29 {dimension_numbers = #tpu.dot_dimension_numbers<[1], [0], [0], [1], [0, 0, 1, 1], [], []>} : vector<1x64xf32>, vector<64x256xf32>, vector<1x256xf32> -> vector<1x256xf32>
    %140 = vector.extract_strided_slice %18 {offsets = [2, 0], sizes = [1, 128], strides = [1, 1]} : vector<8x256xf32> to vector<1x128xf32>
    %141 = vector.extract_strided_slice %139 {offsets = [0, 0], sizes = [1, 128], strides = [1, 1]} : vector<1x256xf32> to vector<1x128xf32>
    %142 = arith.addf %140, %141 : vector<1x128xf32>
    %143 = vector.extract_strided_slice %18 {offsets = [5, 128], sizes = [1, 128], strides = [1, 1]} : vector<8x256xf32> to vector<1x128xf32>
    %144 = vector.extract_strided_slice %139 {offsets = [0, 128], sizes = [1, 128], strides = [1, 1]} : vector<1x256xf32> to vector<1x128xf32>
    %145 = arith.addf %143, %144 : vector<1x128xf32>
    %146 = vector.extract_strided_slice %142 {offsets = [0, 0], sizes = [1, 32], strides = [1, 1]} : vector<1x128xf32> to vector<1x32xf32>
    %147 = arith.negf %146 : vector<1x32xf32>
    %148 = math.exp %147 : vector<1x32xf32>
    %cst_30 = arith.constant 1.000000e+00 : f32
    %149 = vector.broadcast %cst_30 : f32 to vector<1x32xf32>
    %150 = arith.addf %149, %148 : vector<1x32xf32>
    %151 = arith.divf %149, %150 : vector<1x32xf32>
    %152 = vector.extract_strided_slice %142 {offsets = [0, 32], sizes = [1, 32], strides = [1, 1]} : vector<1x128xf32> to vector<1x32xf32>
    %153 = arith.negf %152 : vector<1x32xf32>
    %154 = math.exp %153 : vector<1x32xf32>
    %cst_31 = arith.constant 1.000000e+00 : f32
    %155 = vector.broadcast %cst_31 : f32 to vector<1x32xf32>
    %156 = arith.addf %155, %154 : vector<1x32xf32>
    %157 = arith.divf %155, %156 : vector<1x32xf32>
    %158 = vector.extract_strided_slice %142 {offsets = [0, 64], sizes = [1, 32], strides = [1, 1]} : vector<1x128xf32> to vector<1x32xf32>
    %159 = math.tanh %158 : vector<1x32xf32>
    %160 = vector.extract_strided_slice %142 {offsets = [0, 96], sizes = [1, 32], strides = [1, 1]} : vector<1x128xf32> to vector<1x32xf32>
    %161 = arith.negf %160 : vector<1x32xf32>
    %162 = math.exp %161 : vector<1x32xf32>
    %cst_32 = arith.constant 1.000000e+00 : f32
    %163 = vector.broadcast %cst_32 : f32 to vector<1x32xf32>
    %164 = arith.addf %163, %162 : vector<1x32xf32>
    %165 = arith.divf %163, %164 : vector<1x32xf32>
    %166 = arith.mulf %157, %110 : vector<1x32xf32>
    %167 = arith.mulf %151, %159 : vector<1x32xf32>
    %168 = arith.addf %166, %167 : vector<1x32xf32>
    %169 = math.tanh %168 : vector<1x32xf32>
    %170 = arith.mulf %165, %169 : vector<1x32xf32>
    %171 = vector.extract_strided_slice %145 {offsets = [0, 0], sizes = [1, 32], strides = [1, 1]} : vector<1x128xf32> to vector<1x32xf32>
    %172 = arith.negf %171 : vector<1x32xf32>
    %173 = math.exp %172 : vector<1x32xf32>
    %cst_33 = arith.constant 1.000000e+00 : f32
    %174 = vector.broadcast %cst_33 : f32 to vector<1x32xf32>
    %175 = arith.addf %174, %173 : vector<1x32xf32>
    %176 = arith.divf %174, %175 : vector<1x32xf32>
    %177 = vector.extract_strided_slice %145 {offsets = [0, 32], sizes = [1, 32], strides = [1, 1]} : vector<1x128xf32> to vector<1x32xf32>
    %178 = arith.negf %177 : vector<1x32xf32>
    %179 = math.exp %178 : vector<1x32xf32>
    %cst_34 = arith.constant 1.000000e+00 : f32
    %180 = vector.broadcast %cst_34 : f32 to vector<1x32xf32>
    %181 = arith.addf %180, %179 : vector<1x32xf32>
    %182 = arith.divf %180, %181 : vector<1x32xf32>
    %183 = vector.extract_strided_slice %145 {offsets = [0, 64], sizes = [1, 32], strides = [1, 1]} : vector<1x128xf32> to vector<1x32xf32>
    %184 = math.tanh %183 : vector<1x32xf32>
    %185 = vector.extract_strided_slice %145 {offsets = [0, 96], sizes = [1, 32], strides = [1, 1]} : vector<1x128xf32> to vector<1x32xf32>
    %186 = arith.negf %185 : vector<1x32xf32>
    %187 = math.exp %186 : vector<1x32xf32>
    %cst_35 = arith.constant 1.000000e+00 : f32
    %188 = vector.broadcast %cst_35 : f32 to vector<1x32xf32>
    %189 = arith.addf %188, %187 : vector<1x32xf32>
    %190 = arith.divf %188, %189 : vector<1x32xf32>
    %191 = arith.mulf %182, %135 : vector<1x32xf32>
    %192 = arith.mulf %176, %184 : vector<1x32xf32>
    %193 = arith.addf %191, %192 : vector<1x32xf32>
    %194 = math.tanh %193 : vector<1x32xf32>
    %195 = arith.mulf %190, %194 : vector<1x32xf32>
    %196 = tpu.concatenate %170, %195 in 1 : vector<1x32xf32>, vector<1x32xf32> -> vector<1x64xf32>
    %cst_36 = arith.constant dense<0.000000e+00> : vector<1x256xf32>
    %197 = tpu.matmul %196, %19, %cst_36 {dimension_numbers = #tpu.dot_dimension_numbers<[1], [0], [0], [1], [0, 0, 1, 1], [], []>} : vector<1x64xf32>, vector<64x256xf32>, vector<1x256xf32> -> vector<1x256xf32>
    %198 = vector.extract_strided_slice %18 {offsets = [3, 0], sizes = [1, 128], strides = [1, 1]} : vector<8x256xf32> to vector<1x128xf32>
    %199 = vector.extract_strided_slice %197 {offsets = [0, 0], sizes = [1, 128], strides = [1, 1]} : vector<1x256xf32> to vector<1x128xf32>
    %200 = arith.addf %198, %199 : vector<1x128xf32>
    %201 = vector.extract_strided_slice %18 {offsets = [4, 128], sizes = [1, 128], strides = [1, 1]} : vector<8x256xf32> to vector<1x128xf32>
    %202 = vector.extract_strided_slice %197 {offsets = [0, 128], sizes = [1, 128], strides = [1, 1]} : vector<1x256xf32> to vector<1x128xf32>
    %203 = arith.addf %201, %202 : vector<1x128xf32>
    %204 = vector.extract_strided_slice %200 {offsets = [0, 0], sizes = [1, 32], strides = [1, 1]} : vector<1x128xf32> to vector<1x32xf32>
    %205 = arith.negf %204 : vector<1x32xf32>
    %206 = math.exp %205 : vector<1x32xf32>
    %cst_37 = arith.constant 1.000000e+00 : f32
    %207 = vector.broadcast %cst_37 : f32 to vector<1x32xf32>
    %208 = arith.addf %207, %206 : vector<1x32xf32>
    %209 = arith.divf %207, %208 : vector<1x32xf32>
    %210 = vector.extract_strided_slice %200 {offsets = [0, 32], sizes = [1, 32], strides = [1, 1]} : vector<1x128xf32> to vector<1x32xf32>
    %211 = arith.negf %210 : vector<1x32xf32>
    %212 = math.exp %211 : vector<1x32xf32>
    %cst_38 = arith.constant 1.000000e+00 : f32
    %213 = vector.broadcast %cst_38 : f32 to vector<1x32xf32>
    %214 = arith.addf %213, %212 : vector<1x32xf32>
    %215 = arith.divf %213, %214 : vector<1x32xf32>
    %216 = vector.extract_strided_slice %200 {offsets = [0, 64], sizes = [1, 32], strides = [1, 1]} : vector<1x128xf32> to vector<1x32xf32>
    %217 = math.tanh %216 : vector<1x32xf32>
    %218 = vector.extract_strided_slice %200 {offsets = [0, 96], sizes = [1, 32], strides = [1, 1]} : vector<1x128xf32> to vector<1x32xf32>
    %219 = arith.negf %218 : vector<1x32xf32>
    %220 = math.exp %219 : vector<1x32xf32>
    %cst_39 = arith.constant 1.000000e+00 : f32
    %221 = vector.broadcast %cst_39 : f32 to vector<1x32xf32>
    %222 = arith.addf %221, %220 : vector<1x32xf32>
    %223 = arith.divf %221, %222 : vector<1x32xf32>
    %224 = arith.mulf %215, %168 : vector<1x32xf32>
    %225 = arith.mulf %209, %217 : vector<1x32xf32>
    %226 = arith.addf %224, %225 : vector<1x32xf32>
    %227 = math.tanh %226 : vector<1x32xf32>
    %228 = arith.mulf %223, %227 : vector<1x32xf32>
    %229 = vector.extract_strided_slice %203 {offsets = [0, 0], sizes = [1, 32], strides = [1, 1]} : vector<1x128xf32> to vector<1x32xf32>
    %230 = arith.negf %229 : vector<1x32xf32>
    %231 = math.exp %230 : vector<1x32xf32>
    %cst_40 = arith.constant 1.000000e+00 : f32
    %232 = vector.broadcast %cst_40 : f32 to vector<1x32xf32>
    %233 = arith.addf %232, %231 : vector<1x32xf32>
    %234 = arith.divf %232, %233 : vector<1x32xf32>
    %235 = vector.extract_strided_slice %203 {offsets = [0, 32], sizes = [1, 32], strides = [1, 1]} : vector<1x128xf32> to vector<1x32xf32>
    %236 = arith.negf %235 : vector<1x32xf32>
    %237 = math.exp %236 : vector<1x32xf32>
    %cst_41 = arith.constant 1.000000e+00 : f32
    %238 = vector.broadcast %cst_41 : f32 to vector<1x32xf32>
    %239 = arith.addf %238, %237 : vector<1x32xf32>
    %240 = arith.divf %238, %239 : vector<1x32xf32>
    %241 = vector.extract_strided_slice %203 {offsets = [0, 64], sizes = [1, 32], strides = [1, 1]} : vector<1x128xf32> to vector<1x32xf32>
    %242 = math.tanh %241 : vector<1x32xf32>
    %243 = vector.extract_strided_slice %203 {offsets = [0, 96], sizes = [1, 32], strides = [1, 1]} : vector<1x128xf32> to vector<1x32xf32>
    %244 = arith.negf %243 : vector<1x32xf32>
    %245 = math.exp %244 : vector<1x32xf32>
    %cst_42 = arith.constant 1.000000e+00 : f32
    %246 = vector.broadcast %cst_42 : f32 to vector<1x32xf32>
    %247 = arith.addf %246, %245 : vector<1x32xf32>
    %248 = arith.divf %246, %247 : vector<1x32xf32>
    %249 = arith.mulf %240, %193 : vector<1x32xf32>
    %250 = arith.mulf %234, %242 : vector<1x32xf32>
    %251 = arith.addf %249, %250 : vector<1x32xf32>
    %252 = math.tanh %251 : vector<1x32xf32>
    %253 = arith.mulf %248, %252 : vector<1x32xf32>
    %254 = tpu.concatenate %228, %253 in 1 : vector<1x32xf32>, vector<1x32xf32> -> vector<1x64xf32>
    %cst_43 = arith.constant dense<0.000000e+00> : vector<1x256xf32>
    %255 = tpu.matmul %254, %19, %cst_43 {dimension_numbers = #tpu.dot_dimension_numbers<[1], [0], [0], [1], [0, 0, 1, 1], [], []>} : vector<1x64xf32>, vector<64x256xf32>, vector<1x256xf32> -> vector<1x256xf32>
    %256 = vector.extract_strided_slice %18 {offsets = [4, 0], sizes = [1, 128], strides = [1, 1]} : vector<8x256xf32> to vector<1x128xf32>
    %257 = vector.extract_strided_slice %255 {offsets = [0, 0], sizes = [1, 128], strides = [1, 1]} : vector<1x256xf32> to vector<1x128xf32>
    %258 = arith.addf %256, %257 : vector<1x128xf32>
    %259 = vector.extract_strided_slice %18 {offsets = [3, 128], sizes = [1, 128], strides = [1, 1]} : vector<8x256xf32> to vector<1x128xf32>
    %260 = vector.extract_strided_slice %255 {offsets = [0, 128], sizes = [1, 128], strides = [1, 1]} : vector<1x256xf32> to vector<1x128xf32>
    %261 = arith.addf %259, %260 : vector<1x128xf32>
    %262 = vector.extract_strided_slice %258 {offsets = [0, 0], sizes = [1, 32], strides = [1, 1]} : vector<1x128xf32> to vector<1x32xf32>
    %263 = arith.negf %262 : vector<1x32xf32>
    %264 = math.exp %263 : vector<1x32xf32>
    %cst_44 = arith.constant 1.000000e+00 : f32
    %265 = vector.broadcast %cst_44 : f32 to vector<1x32xf32>
    %266 = arith.addf %265, %264 : vector<1x32xf32>
    %267 = arith.divf %265, %266 : vector<1x32xf32>
    %268 = vector.extract_strided_slice %258 {offsets = [0, 32], sizes = [1, 32], strides = [1, 1]} : vector<1x128xf32> to vector<1x32xf32>
    %269 = arith.negf %268 : vector<1x32xf32>
    %270 = math.exp %269 : vector<1x32xf32>
    %cst_45 = arith.constant 1.000000e+00 : f32
    %271 = vector.broadcast %cst_45 : f32 to vector<1x32xf32>
    %272 = arith.addf %271, %270 : vector<1x32xf32>
    %273 = arith.divf %271, %272 : vector<1x32xf32>
    %274 = vector.extract_strided_slice %258 {offsets = [0, 64], sizes = [1, 32], strides = [1, 1]} : vector<1x128xf32> to vector<1x32xf32>
    %275 = math.tanh %274 : vector<1x32xf32>
    %276 = vector.extract_strided_slice %258 {offsets = [0, 96], sizes = [1, 32], strides = [1, 1]} : vector<1x128xf32> to vector<1x32xf32>
    %277 = arith.negf %276 : vector<1x32xf32>
    %278 = math.exp %277 : vector<1x32xf32>
    %cst_46 = arith.constant 1.000000e+00 : f32
    %279 = vector.broadcast %cst_46 : f32 to vector<1x32xf32>
    %280 = arith.addf %279, %278 : vector<1x32xf32>
    %281 = arith.divf %279, %280 : vector<1x32xf32>
    %282 = arith.mulf %273, %226 : vector<1x32xf32>
    %283 = arith.mulf %267, %275 : vector<1x32xf32>
    %284 = arith.addf %282, %283 : vector<1x32xf32>
    %285 = math.tanh %284 : vector<1x32xf32>
    %286 = arith.mulf %281, %285 : vector<1x32xf32>
    %287 = vector.extract_strided_slice %261 {offsets = [0, 0], sizes = [1, 32], strides = [1, 1]} : vector<1x128xf32> to vector<1x32xf32>
    %288 = arith.negf %287 : vector<1x32xf32>
    %289 = math.exp %288 : vector<1x32xf32>
    %cst_47 = arith.constant 1.000000e+00 : f32
    %290 = vector.broadcast %cst_47 : f32 to vector<1x32xf32>
    %291 = arith.addf %290, %289 : vector<1x32xf32>
    %292 = arith.divf %290, %291 : vector<1x32xf32>
    %293 = vector.extract_strided_slice %261 {offsets = [0, 32], sizes = [1, 32], strides = [1, 1]} : vector<1x128xf32> to vector<1x32xf32>
    %294 = arith.negf %293 : vector<1x32xf32>
    %295 = math.exp %294 : vector<1x32xf32>
    %cst_48 = arith.constant 1.000000e+00 : f32
    %296 = vector.broadcast %cst_48 : f32 to vector<1x32xf32>
    %297 = arith.addf %296, %295 : vector<1x32xf32>
    %298 = arith.divf %296, %297 : vector<1x32xf32>
    %299 = vector.extract_strided_slice %261 {offsets = [0, 64], sizes = [1, 32], strides = [1, 1]} : vector<1x128xf32> to vector<1x32xf32>
    %300 = math.tanh %299 : vector<1x32xf32>
    %301 = vector.extract_strided_slice %261 {offsets = [0, 96], sizes = [1, 32], strides = [1, 1]} : vector<1x128xf32> to vector<1x32xf32>
    %302 = arith.negf %301 : vector<1x32xf32>
    %303 = math.exp %302 : vector<1x32xf32>
    %cst_49 = arith.constant 1.000000e+00 : f32
    %304 = vector.broadcast %cst_49 : f32 to vector<1x32xf32>
    %305 = arith.addf %304, %303 : vector<1x32xf32>
    %306 = arith.divf %304, %305 : vector<1x32xf32>
    %307 = arith.mulf %298, %251 : vector<1x32xf32>
    %308 = arith.mulf %292, %300 : vector<1x32xf32>
    %309 = arith.addf %307, %308 : vector<1x32xf32>
    %310 = math.tanh %309 : vector<1x32xf32>
    %311 = arith.mulf %306, %310 : vector<1x32xf32>
    %312 = tpu.concatenate %286, %311 in 1 : vector<1x32xf32>, vector<1x32xf32> -> vector<1x64xf32>
    %cst_50 = arith.constant dense<0.000000e+00> : vector<1x256xf32>
    %313 = tpu.matmul %312, %19, %cst_50 {dimension_numbers = #tpu.dot_dimension_numbers<[1], [0], [0], [1], [0, 0, 1, 1], [], []>} : vector<1x64xf32>, vector<64x256xf32>, vector<1x256xf32> -> vector<1x256xf32>
    %314 = vector.extract_strided_slice %18 {offsets = [5, 0], sizes = [1, 128], strides = [1, 1]} : vector<8x256xf32> to vector<1x128xf32>
    %315 = vector.extract_strided_slice %313 {offsets = [0, 0], sizes = [1, 128], strides = [1, 1]} : vector<1x256xf32> to vector<1x128xf32>
    %316 = arith.addf %314, %315 : vector<1x128xf32>
    %317 = vector.extract_strided_slice %18 {offsets = [2, 128], sizes = [1, 128], strides = [1, 1]} : vector<8x256xf32> to vector<1x128xf32>
    %318 = vector.extract_strided_slice %313 {offsets = [0, 128], sizes = [1, 128], strides = [1, 1]} : vector<1x256xf32> to vector<1x128xf32>
    %319 = arith.addf %317, %318 : vector<1x128xf32>
    %320 = vector.extract_strided_slice %316 {offsets = [0, 0], sizes = [1, 32], strides = [1, 1]} : vector<1x128xf32> to vector<1x32xf32>
    %321 = arith.negf %320 : vector<1x32xf32>
    %322 = math.exp %321 : vector<1x32xf32>
    %cst_51 = arith.constant 1.000000e+00 : f32
    %323 = vector.broadcast %cst_51 : f32 to vector<1x32xf32>
    %324 = arith.addf %323, %322 : vector<1x32xf32>
    %325 = arith.divf %323, %324 : vector<1x32xf32>
    %326 = vector.extract_strided_slice %316 {offsets = [0, 32], sizes = [1, 32], strides = [1, 1]} : vector<1x128xf32> to vector<1x32xf32>
    %327 = arith.negf %326 : vector<1x32xf32>
    %328 = math.exp %327 : vector<1x32xf32>
    %cst_52 = arith.constant 1.000000e+00 : f32
    %329 = vector.broadcast %cst_52 : f32 to vector<1x32xf32>
    %330 = arith.addf %329, %328 : vector<1x32xf32>
    %331 = arith.divf %329, %330 : vector<1x32xf32>
    %332 = vector.extract_strided_slice %316 {offsets = [0, 64], sizes = [1, 32], strides = [1, 1]} : vector<1x128xf32> to vector<1x32xf32>
    %333 = math.tanh %332 : vector<1x32xf32>
    %334 = vector.extract_strided_slice %316 {offsets = [0, 96], sizes = [1, 32], strides = [1, 1]} : vector<1x128xf32> to vector<1x32xf32>
    %335 = arith.negf %334 : vector<1x32xf32>
    %336 = math.exp %335 : vector<1x32xf32>
    %cst_53 = arith.constant 1.000000e+00 : f32
    %337 = vector.broadcast %cst_53 : f32 to vector<1x32xf32>
    %338 = arith.addf %337, %336 : vector<1x32xf32>
    %339 = arith.divf %337, %338 : vector<1x32xf32>
    %340 = arith.mulf %331, %284 : vector<1x32xf32>
    %341 = arith.mulf %325, %333 : vector<1x32xf32>
    %342 = arith.addf %340, %341 : vector<1x32xf32>
    %343 = math.tanh %342 : vector<1x32xf32>
    %344 = arith.mulf %339, %343 : vector<1x32xf32>
    %345 = vector.extract_strided_slice %319 {offsets = [0, 0], sizes = [1, 32], strides = [1, 1]} : vector<1x128xf32> to vector<1x32xf32>
    %346 = arith.negf %345 : vector<1x32xf32>
    %347 = math.exp %346 : vector<1x32xf32>
    %cst_54 = arith.constant 1.000000e+00 : f32
    %348 = vector.broadcast %cst_54 : f32 to vector<1x32xf32>
    %349 = arith.addf %348, %347 : vector<1x32xf32>
    %350 = arith.divf %348, %349 : vector<1x32xf32>
    %351 = vector.extract_strided_slice %319 {offsets = [0, 32], sizes = [1, 32], strides = [1, 1]} : vector<1x128xf32> to vector<1x32xf32>
    %352 = arith.negf %351 : vector<1x32xf32>
    %353 = math.exp %352 : vector<1x32xf32>
    %cst_55 = arith.constant 1.000000e+00 : f32
    %354 = vector.broadcast %cst_55 : f32 to vector<1x32xf32>
    %355 = arith.addf %354, %353 : vector<1x32xf32>
    %356 = arith.divf %354, %355 : vector<1x32xf32>
    %357 = vector.extract_strided_slice %319 {offsets = [0, 64], sizes = [1, 32], strides = [1, 1]} : vector<1x128xf32> to vector<1x32xf32>
    %358 = math.tanh %357 : vector<1x32xf32>
    %359 = vector.extract_strided_slice %319 {offsets = [0, 96], sizes = [1, 32], strides = [1, 1]} : vector<1x128xf32> to vector<1x32xf32>
    %360 = arith.negf %359 : vector<1x32xf32>
    %361 = math.exp %360 : vector<1x32xf32>
    %cst_56 = arith.constant 1.000000e+00 : f32
    %362 = vector.broadcast %cst_56 : f32 to vector<1x32xf32>
    %363 = arith.addf %362, %361 : vector<1x32xf32>
    %364 = arith.divf %362, %363 : vector<1x32xf32>
    %365 = arith.mulf %356, %309 : vector<1x32xf32>
    %366 = arith.mulf %350, %358 : vector<1x32xf32>
    %367 = arith.addf %365, %366 : vector<1x32xf32>
    %368 = math.tanh %367 : vector<1x32xf32>
    %369 = arith.mulf %364, %368 : vector<1x32xf32>
    %370 = tpu.concatenate %344, %369 in 1 : vector<1x32xf32>, vector<1x32xf32> -> vector<1x64xf32>
    %cst_57 = arith.constant dense<0.000000e+00> : vector<1x256xf32>
    %371 = tpu.matmul %370, %19, %cst_57 {dimension_numbers = #tpu.dot_dimension_numbers<[1], [0], [0], [1], [0, 0, 1, 1], [], []>} : vector<1x64xf32>, vector<64x256xf32>, vector<1x256xf32> -> vector<1x256xf32>
    %372 = vector.extract_strided_slice %18 {offsets = [6, 0], sizes = [1, 128], strides = [1, 1]} : vector<8x256xf32> to vector<1x128xf32>
    %373 = vector.extract_strided_slice %371 {offsets = [0, 0], sizes = [1, 128], strides = [1, 1]} : vector<1x256xf32> to vector<1x128xf32>
    %374 = arith.addf %372, %373 : vector<1x128xf32>
    %375 = vector.extract_strided_slice %18 {offsets = [1, 128], sizes = [1, 128], strides = [1, 1]} : vector<8x256xf32> to vector<1x128xf32>
    %376 = vector.extract_strided_slice %371 {offsets = [0, 128], sizes = [1, 128], strides = [1, 1]} : vector<1x256xf32> to vector<1x128xf32>
    %377 = arith.addf %375, %376 : vector<1x128xf32>
    %378 = vector.extract_strided_slice %374 {offsets = [0, 0], sizes = [1, 32], strides = [1, 1]} : vector<1x128xf32> to vector<1x32xf32>
    %379 = arith.negf %378 : vector<1x32xf32>
    %380 = math.exp %379 : vector<1x32xf32>
    %cst_58 = arith.constant 1.000000e+00 : f32
    %381 = vector.broadcast %cst_58 : f32 to vector<1x32xf32>
    %382 = arith.addf %381, %380 : vector<1x32xf32>
    %383 = arith.divf %381, %382 : vector<1x32xf32>
    %384 = vector.extract_strided_slice %374 {offsets = [0, 32], sizes = [1, 32], strides = [1, 1]} : vector<1x128xf32> to vector<1x32xf32>
    %385 = arith.negf %384 : vector<1x32xf32>
    %386 = math.exp %385 : vector<1x32xf32>
    %cst_59 = arith.constant 1.000000e+00 : f32
    %387 = vector.broadcast %cst_59 : f32 to vector<1x32xf32>
    %388 = arith.addf %387, %386 : vector<1x32xf32>
    %389 = arith.divf %387, %388 : vector<1x32xf32>
    %390 = vector.extract_strided_slice %374 {offsets = [0, 64], sizes = [1, 32], strides = [1, 1]} : vector<1x128xf32> to vector<1x32xf32>
    %391 = math.tanh %390 : vector<1x32xf32>
    %392 = vector.extract_strided_slice %374 {offsets = [0, 96], sizes = [1, 32], strides = [1, 1]} : vector<1x128xf32> to vector<1x32xf32>
    %393 = arith.negf %392 : vector<1x32xf32>
    %394 = math.exp %393 : vector<1x32xf32>
    %cst_60 = arith.constant 1.000000e+00 : f32
    %395 = vector.broadcast %cst_60 : f32 to vector<1x32xf32>
    %396 = arith.addf %395, %394 : vector<1x32xf32>
    %397 = arith.divf %395, %396 : vector<1x32xf32>
    %398 = arith.mulf %389, %342 : vector<1x32xf32>
    %399 = arith.mulf %383, %391 : vector<1x32xf32>
    %400 = arith.addf %398, %399 : vector<1x32xf32>
    %401 = math.tanh %400 : vector<1x32xf32>
    %402 = arith.mulf %397, %401 : vector<1x32xf32>
    %403 = vector.extract_strided_slice %377 {offsets = [0, 0], sizes = [1, 32], strides = [1, 1]} : vector<1x128xf32> to vector<1x32xf32>
    %404 = arith.negf %403 : vector<1x32xf32>
    %405 = math.exp %404 : vector<1x32xf32>
    %cst_61 = arith.constant 1.000000e+00 : f32
    %406 = vector.broadcast %cst_61 : f32 to vector<1x32xf32>
    %407 = arith.addf %406, %405 : vector<1x32xf32>
    %408 = arith.divf %406, %407 : vector<1x32xf32>
    %409 = vector.extract_strided_slice %377 {offsets = [0, 32], sizes = [1, 32], strides = [1, 1]} : vector<1x128xf32> to vector<1x32xf32>
    %410 = arith.negf %409 : vector<1x32xf32>
    %411 = math.exp %410 : vector<1x32xf32>
    %cst_62 = arith.constant 1.000000e+00 : f32
    %412 = vector.broadcast %cst_62 : f32 to vector<1x32xf32>
    %413 = arith.addf %412, %411 : vector<1x32xf32>
    %414 = arith.divf %412, %413 : vector<1x32xf32>
    %415 = vector.extract_strided_slice %377 {offsets = [0, 64], sizes = [1, 32], strides = [1, 1]} : vector<1x128xf32> to vector<1x32xf32>
    %416 = math.tanh %415 : vector<1x32xf32>
    %417 = vector.extract_strided_slice %377 {offsets = [0, 96], sizes = [1, 32], strides = [1, 1]} : vector<1x128xf32> to vector<1x32xf32>
    %418 = arith.negf %417 : vector<1x32xf32>
    %419 = math.exp %418 : vector<1x32xf32>
    %cst_63 = arith.constant 1.000000e+00 : f32
    %420 = vector.broadcast %cst_63 : f32 to vector<1x32xf32>
    %421 = arith.addf %420, %419 : vector<1x32xf32>
    %422 = arith.divf %420, %421 : vector<1x32xf32>
    %423 = arith.mulf %414, %367 : vector<1x32xf32>
    %424 = arith.mulf %408, %416 : vector<1x32xf32>
    %425 = arith.addf %423, %424 : vector<1x32xf32>
    %426 = math.tanh %425 : vector<1x32xf32>
    %427 = arith.mulf %422, %426 : vector<1x32xf32>
    %428 = tpu.concatenate %402, %427 in 1 : vector<1x32xf32>, vector<1x32xf32> -> vector<1x64xf32>
    %cst_64 = arith.constant dense<0.000000e+00> : vector<1x256xf32>
    %429 = tpu.matmul %428, %19, %cst_64 {dimension_numbers = #tpu.dot_dimension_numbers<[1], [0], [0], [1], [0, 0, 1, 1], [], []>} : vector<1x64xf32>, vector<64x256xf32>, vector<1x256xf32> -> vector<1x256xf32>
    %430 = vector.extract_strided_slice %18 {offsets = [7, 0], sizes = [1, 128], strides = [1, 1]} : vector<8x256xf32> to vector<1x128xf32>
    %431 = vector.extract_strided_slice %429 {offsets = [0, 0], sizes = [1, 128], strides = [1, 1]} : vector<1x256xf32> to vector<1x128xf32>
    %432 = arith.addf %430, %431 : vector<1x128xf32>
    %433 = vector.extract_strided_slice %18 {offsets = [0, 128], sizes = [1, 128], strides = [1, 1]} : vector<8x256xf32> to vector<1x128xf32>
    %434 = vector.extract_strided_slice %429 {offsets = [0, 128], sizes = [1, 128], strides = [1, 1]} : vector<1x256xf32> to vector<1x128xf32>
    %435 = arith.addf %433, %434 : vector<1x128xf32>
    %436 = vector.extract_strided_slice %432 {offsets = [0, 0], sizes = [1, 32], strides = [1, 1]} : vector<1x128xf32> to vector<1x32xf32>
    %437 = arith.negf %436 : vector<1x32xf32>
    %438 = math.exp %437 : vector<1x32xf32>
    %cst_65 = arith.constant 1.000000e+00 : f32
    %439 = vector.broadcast %cst_65 : f32 to vector<1x32xf32>
    %440 = arith.addf %439, %438 : vector<1x32xf32>
    %441 = arith.divf %439, %440 : vector<1x32xf32>
    %442 = vector.extract_strided_slice %432 {offsets = [0, 32], sizes = [1, 32], strides = [1, 1]} : vector<1x128xf32> to vector<1x32xf32>
    %443 = arith.negf %442 : vector<1x32xf32>
    %444 = math.exp %443 : vector<1x32xf32>
    %cst_66 = arith.constant 1.000000e+00 : f32
    %445 = vector.broadcast %cst_66 : f32 to vector<1x32xf32>
    %446 = arith.addf %445, %444 : vector<1x32xf32>
    %447 = arith.divf %445, %446 : vector<1x32xf32>
    %448 = vector.extract_strided_slice %432 {offsets = [0, 64], sizes = [1, 32], strides = [1, 1]} : vector<1x128xf32> to vector<1x32xf32>
    %449 = math.tanh %448 : vector<1x32xf32>
    %450 = vector.extract_strided_slice %432 {offsets = [0, 96], sizes = [1, 32], strides = [1, 1]} : vector<1x128xf32> to vector<1x32xf32>
    %451 = arith.negf %450 : vector<1x32xf32>
    %452 = math.exp %451 : vector<1x32xf32>
    %cst_67 = arith.constant 1.000000e+00 : f32
    %453 = vector.broadcast %cst_67 : f32 to vector<1x32xf32>
    %454 = arith.addf %453, %452 : vector<1x32xf32>
    %455 = arith.divf %453, %454 : vector<1x32xf32>
    %456 = arith.mulf %447, %400 : vector<1x32xf32>
    %457 = arith.mulf %441, %449 : vector<1x32xf32>
    %458 = arith.addf %456, %457 : vector<1x32xf32>
    %459 = math.tanh %458 : vector<1x32xf32>
    %460 = arith.mulf %455, %459 : vector<1x32xf32>
    %461 = vector.extract_strided_slice %435 {offsets = [0, 0], sizes = [1, 32], strides = [1, 1]} : vector<1x128xf32> to vector<1x32xf32>
    %462 = arith.negf %461 : vector<1x32xf32>
    %463 = math.exp %462 : vector<1x32xf32>
    %cst_68 = arith.constant 1.000000e+00 : f32
    %464 = vector.broadcast %cst_68 : f32 to vector<1x32xf32>
    %465 = arith.addf %464, %463 : vector<1x32xf32>
    %466 = arith.divf %464, %465 : vector<1x32xf32>
    %467 = vector.extract_strided_slice %435 {offsets = [0, 32], sizes = [1, 32], strides = [1, 1]} : vector<1x128xf32> to vector<1x32xf32>
    %468 = arith.negf %467 : vector<1x32xf32>
    %469 = math.exp %468 : vector<1x32xf32>
    %cst_69 = arith.constant 1.000000e+00 : f32
    %470 = vector.broadcast %cst_69 : f32 to vector<1x32xf32>
    %471 = arith.addf %470, %469 : vector<1x32xf32>
    %472 = arith.divf %470, %471 : vector<1x32xf32>
    %473 = vector.extract_strided_slice %435 {offsets = [0, 64], sizes = [1, 32], strides = [1, 1]} : vector<1x128xf32> to vector<1x32xf32>
    %474 = math.tanh %473 : vector<1x32xf32>
    %475 = vector.extract_strided_slice %435 {offsets = [0, 96], sizes = [1, 32], strides = [1, 1]} : vector<1x128xf32> to vector<1x32xf32>
    %476 = arith.negf %475 : vector<1x32xf32>
    %477 = math.exp %476 : vector<1x32xf32>
    %cst_70 = arith.constant 1.000000e+00 : f32
    %478 = vector.broadcast %cst_70 : f32 to vector<1x32xf32>
    %479 = arith.addf %478, %477 : vector<1x32xf32>
    %480 = arith.divf %478, %479 : vector<1x32xf32>
    %481 = arith.mulf %472, %425 : vector<1x32xf32>
    %482 = arith.mulf %466, %474 : vector<1x32xf32>
    %483 = arith.addf %481, %482 : vector<1x32xf32>
    %484 = math.tanh %483 : vector<1x32xf32>
    %485 = arith.mulf %480, %484 : vector<1x32xf32>
    %486 = tpu.concatenate %54, %112, %170, %228, %286, %344, %402, %460 in 0 : vector<1x32xf32>, vector<1x32xf32>, vector<1x32xf32>, vector<1x32xf32>, vector<1x32xf32>, vector<1x32xf32>, vector<1x32xf32>, vector<1x32xf32> -> vector<8x32xf32>
    %487 = tpu.concatenate %485, %427, %369, %311, %253, %195, %137, %79 in 0 : vector<1x32xf32>, vector<1x32xf32>, vector<1x32xf32>, vector<1x32xf32>, vector<1x32xf32>, vector<1x32xf32>, vector<1x32xf32>, vector<1x32xf32> -> vector<8x32xf32>
    %488 = tpu.concatenate %486, %487 in 1 : vector<8x32xf32>, vector<8x32xf32> -> vector<8x64xf32>
    %c0_71 = arith.constant 0 : index
    %c0_72 = arith.constant 0 : index
    %489 = vector.load %arg7[%c0_71, %c0_72] : memref<64x128xf32, #tpu.memory_space<vmem>>, vector<64x128xf32>
    %cst_73 = arith.constant dense<0.000000e+00> : vector<8x128xf32>
    %490 = tpu.matmul %488, %489, %cst_73 {dimension_numbers = #tpu.dot_dimension_numbers<[1], [0], [0], [1], [0, 0, 1, 1], [], []>} : vector<8x64xf32>, vector<64x128xf32>, vector<8x128xf32> -> vector<8x128xf32>
    %491 = vector.extract_strided_slice %490 {offsets = [0, 0], sizes = [8, 32], strides = [1, 1]} : vector<8x128xf32> to vector<8x32xf32>
    %492 = vector.extract_strided_slice %490 {offsets = [0, 32], sizes = [8, 32], strides = [1, 1]} : vector<8x128xf32> to vector<8x32xf32>
    %493 = vector.extract_strided_slice %490 {offsets = [0, 64], sizes = [8, 32], strides = [1, 1]} : vector<8x128xf32> to vector<8x32xf32>
    %494 = vector.extract_strided_slice %490 {offsets = [0, 96], sizes = [8, 32], strides = [1, 1]} : vector<8x128xf32> to vector<8x32xf32>
    %495 = vector.extract_strided_slice %492 {offsets = [0, 0], sizes = [1, 32], strides = [1, 1]} : vector<8x32xf32> to vector<1x32xf32>
    %496 = vector.broadcast %495 : vector<1x32xf32> to vector<8x32xf32>
    %497 = arith.addf %491, %496 : vector<8x32xf32>
    %498 = vector.extract_strided_slice %492 {offsets = [1, 0], sizes = [1, 32], strides = [1, 1]} : vector<8x32xf32> to vector<1x32xf32>
    %499 = vector.broadcast %498 : vector<1x32xf32> to vector<8x32xf32>
    %500 = arith.addf %491, %499 : vector<8x32xf32>
    %501 = vector.extract_strided_slice %492 {offsets = [2, 0], sizes = [1, 32], strides = [1, 1]} : vector<8x32xf32> to vector<1x32xf32>
    %502 = vector.broadcast %501 : vector<1x32xf32> to vector<8x32xf32>
    %503 = arith.addf %491, %502 : vector<8x32xf32>
    %504 = vector.extract_strided_slice %492 {offsets = [3, 0], sizes = [1, 32], strides = [1, 1]} : vector<8x32xf32> to vector<1x32xf32>
    %505 = vector.broadcast %504 : vector<1x32xf32> to vector<8x32xf32>
    %506 = arith.addf %491, %505 : vector<8x32xf32>
    %507 = vector.extract_strided_slice %492 {offsets = [4, 0], sizes = [1, 32], strides = [1, 1]} : vector<8x32xf32> to vector<1x32xf32>
    %508 = vector.broadcast %507 : vector<1x32xf32> to vector<8x32xf32>
    %509 = arith.addf %491, %508 : vector<8x32xf32>
    %510 = vector.extract_strided_slice %492 {offsets = [5, 0], sizes = [1, 32], strides = [1, 1]} : vector<8x32xf32> to vector<1x32xf32>
    %511 = vector.broadcast %510 : vector<1x32xf32> to vector<8x32xf32>
    %512 = arith.addf %491, %511 : vector<8x32xf32>
    %513 = vector.extract_strided_slice %492 {offsets = [6, 0], sizes = [1, 32], strides = [1, 1]} : vector<8x32xf32> to vector<1x32xf32>
    %514 = vector.broadcast %513 : vector<1x32xf32> to vector<8x32xf32>
    %515 = arith.addf %491, %514 : vector<8x32xf32>
    %516 = vector.extract_strided_slice %492 {offsets = [7, 0], sizes = [1, 32], strides = [1, 1]} : vector<8x32xf32> to vector<1x32xf32>
    %517 = vector.broadcast %516 : vector<1x32xf32> to vector<8x32xf32>
    %518 = arith.addf %491, %517 : vector<8x32xf32>
    %519 = tpu.concatenate %497, %500, %503, %506, %509, %512, %515, %518 in 0 : vector<8x32xf32>, vector<8x32xf32>, vector<8x32xf32>, vector<8x32xf32>, vector<8x32xf32>, vector<8x32xf32>, vector<8x32xf32>, vector<8x32xf32> -> vector<64x32xf32>
    %c0_74 = arith.constant 0 : index
    %c0_75 = arith.constant 0 : index
    %520 = vector.load %arg8[%c0_74, %c0_75] : memref<1x32xf32, #tpu.memory_space<vmem>>, vector<1x32xf32>
    %521 = vector.broadcast %520 : vector<1x32xf32> to vector<64x32xf32>
    %522 = arith.addf %519, %521 : vector<64x32xf32>
    %523 = math.tanh %522 : vector<64x32xf32>
    %c0_76 = arith.constant 0 : index
    %c0_77 = arith.constant 0 : index
    %524 = vector.load %arg9[%c0_76, %c0_77] : memref<32x1xf32, #tpu.memory_space<vmem>>, vector<32x1xf32>
    %cst_78 = arith.constant dense<0.000000e+00> : vector<64x1xf32>
    %525 = tpu.matmul %523, %524, %cst_78 {dimension_numbers = #tpu.dot_dimension_numbers<[1], [0], [0], [1], [0, 0, 1, 1], [], []>} : vector<64x32xf32>, vector<32x1xf32>, vector<64x1xf32> -> vector<64x1xf32>
    %526 = vector.extract_strided_slice %525 {offsets = [0, 0], sizes = [8, 1], strides = [1, 1]} : vector<64x1xf32> to vector<8x1xf32>
    %527 = vector.extract_strided_slice %525 {offsets = [8, 0], sizes = [8, 1], strides = [1, 1]} : vector<64x1xf32> to vector<8x1xf32>
    %528 = vector.extract_strided_slice %525 {offsets = [16, 0], sizes = [8, 1], strides = [1, 1]} : vector<64x1xf32> to vector<8x1xf32>
    %529 = vector.extract_strided_slice %525 {offsets = [24, 0], sizes = [8, 1], strides = [1, 1]} : vector<64x1xf32> to vector<8x1xf32>
    %530 = vector.extract_strided_slice %525 {offsets = [32, 0], sizes = [8, 1], strides = [1, 1]} : vector<64x1xf32> to vector<8x1xf32>
    %531 = vector.extract_strided_slice %525 {offsets = [40, 0], sizes = [8, 1], strides = [1, 1]} : vector<64x1xf32> to vector<8x1xf32>
    %532 = vector.extract_strided_slice %525 {offsets = [48, 0], sizes = [8, 1], strides = [1, 1]} : vector<64x1xf32> to vector<8x1xf32>
    %533 = vector.extract_strided_slice %525 {offsets = [56, 0], sizes = [8, 1], strides = [1, 1]} : vector<64x1xf32> to vector<8x1xf32>
    %534 = tpu.concatenate %526, %527, %528, %529, %530, %531, %532, %533 in 1 : vector<8x1xf32>, vector<8x1xf32>, vector<8x1xf32>, vector<8x1xf32>, vector<8x1xf32>, vector<8x1xf32>, vector<8x1xf32>, vector<8x1xf32> -> vector<8x8xf32>
    %c0_79 = arith.constant 0 : index
    %c0_80 = arith.constant 0 : index
    %535 = vector.load %arg13[%c0_79, %c0_80] : memref<8x8xf32, #tpu.memory_space<vmem>>, vector<8x8xf32>
    tpu.vector_store %arg13[%c0_79, %c0_80], %534 {strides = array<i32>} : memref<8x8xf32, #tpu.memory_space<vmem>>, vector<8x8xf32>,
    %c0_81 = arith.constant 0 : index
    %c0_82 = arith.constant 0 : index
    %536 = vector.load %arg2[%c0_81, %c0_82] : memref<8x1xi32, #tpu.memory_space<vmem>>, vector<8x1xi32>
    %537 = vector.extract_strided_slice %536 {offsets = [1, 0], sizes = [7, 1], strides = [1, 1]} : vector<8x1xi32> to vector<7x1xi32>
    %538 = tpu.iota {dimensions = array<i32: 1>} : vector<7x8xi32>
    %539 = vector.broadcast %537 : vector<7x1xi32> to vector<7x8xi32>
    %540 = arith.cmpi eq, %539, %538 : vector<7x8xi32>
    %541 = arith.extui %540 : vector<7x8xi1> to vector<7x8xi32>
    %542 = arith.sitofp %541 : vector<7x8xi32> to vector<7x8xf32>
    %cst_83 = arith.constant dense<0.000000e+00> : vector<7x32xf32>
    %543 = tpu.matmul %542, %493, %cst_83 {dimension_numbers = #tpu.dot_dimension_numbers<[1], [0], [0], [1], [0, 0, 1, 1], [], []>} : vector<7x8xf32>, vector<8x32xf32>, vector<7x32xf32> -> vector<7x32xf32>
    %544 = vector.extract_strided_slice %494 {offsets = [1, 0], sizes = [7, 32], strides = [1, 1]} : vector<8x32xf32> to vector<7x32xf32>
    %545 = arith.addf %543, %544 : vector<7x32xf32>
    %c0_84 = arith.constant 0 : index
    %c0_85 = arith.constant 0 : index
    %546 = vector.load %arg10[%c0_84, %c0_85] : memref<1x32xf32, #tpu.memory_space<vmem>>, vector<1x32xf32>
    %547 = vector.broadcast %546 : vector<1x32xf32> to vector<7x32xf32>
    %548 = arith.addf %545, %547 : vector<7x32xf32>
    %549 = math.tanh %548 : vector<7x32xf32>
    %c0_86 = arith.constant 0 : index
    %c0_87 = arith.constant 0 : index
    %550 = vector.load %arg11[%c0_86, %c0_87] : memref<32x8xf32, #tpu.memory_space<vmem>>, vector<32x8xf32>
    %cst_88 = arith.constant dense<0.000000e+00> : vector<7x8xf32>
    %551 = tpu.matmul %549, %550, %cst_88 {dimension_numbers = #tpu.dot_dimension_numbers<[1], [0], [0], [1], [0, 0, 1, 1], [], []>} : vector<7x32xf32>, vector<32x8xf32>, vector<7x8xf32> -> vector<7x8xf32>
    %c0_89 = arith.constant 0 : index
    %c0_90 = arith.constant 0 : index
    %552 = vector.load %arg12[%c0_89, %c0_90] : memref<1x8xf32, #tpu.memory_space<vmem>>, vector<1x8xf32>
    %553 = vector.broadcast %552 : vector<1x8xf32> to vector<7x8xf32>
    %554 = arith.addf %551, %553 : vector<7x8xf32>
    %c0_91 = arith.constant 0 : index
    %c0_92 = arith.constant 0 : index
    %555 = vector.load %arg14[%c0_91, %c0_92] : memref<7x8xf32, #tpu.memory_space<vmem>>, vector<7x8xf32>
    tpu.vector_store %arg14[%c0_91, %c0_92], %554 {strides = array<i32>} : memref<7x8xf32, #tpu.memory_space<vmem>>, vector<7x8xf32>,
    return
  }
}

</mosaic_0001>

<bundles_post_ra>
// kernel: bist_forward.1
= control target key start
LH: loop header
LB: loop body
LE: loop exit
PB: predicated region body
PF: predicated region fallthrough
CT: control target
= control target key end

     0   :  { %20 = vsyncpa [#allocation3], 0  ;;  %v2548_v3 = vmov 0   ;;  %v2549_v4 = vmov 0.0|0.0   ;;  %s3196_s0 = inlined_call_operand.vmem [shape: s32[8,1], index: 0, kind: input, shape index: {}]   ;;  %s3197_s1 = inlined_call_operand.vmem [shape: s32[8,1], index: 1, kind: input, shape index: {}]   ;;  %s3198_s2 = inlined_call_operand.vmem [shape: s32[8,1], index: 2, kind: input, shape index: {}]   ;;  %s3199_s3 = inlined_call_operand.vmem [shape: f32[62,32], index: 3, kind: input, shape index: {}]   ;;  %s3200_s4 = inlined_call_operand.vmem [shape: f32[32,256], index: 4, kind: input, shape index: {}]   ;;  %s3201_s5 = inlined_call_operand.vmem [shape: f32[1,256], index: 5, kind: input, shape index: {}]   ;;  %s3202_s6 = inlined_call_operand.vmem [shape: f32[64,256], index: 6, kind: input, shape index: {}]   ;;  %s3203_s7 = inlined_call_operand.vmem [shape: f32[64,128], index: 7, kind: input, shape index: {}]   ;;  %s3204_s8 = inlined_call_operand.vmem [shape: f32[1,32], index: 8, kind: input, shape index: {}]   ;;  %s3205_s9 = inlined_call_operand.vmem [shape: f32[32,1], index: 9, kind: input, shape index: {}]   ;;  %s3206_s10 = inlined_call_operand.vmem [shape: f32[1,32], index: 10, kind: input, shape index: {}]   ;;  %s3207_s11 = inlined_call_operand.vmem [shape: f32[32,8], index: 11, kind: input, shape index: {}]   ;;  %s3208_s12 = inlined_call_operand.vmem [shape: f32[1,8], index: 12, kind: input, shape index: {}]   ;;  %s3209_s13 = inlined_call_operand.hbm [shape: f32[8,8], index: 13, kind: output, shape index: {0}]   ;;  %s3210_s14 = inlined_call_operand.hbm [shape: f32[7,8], index: 14, kind: output, shape index: {1}]  }
   0x1   :  { %v50_v0 = vld [vmem:[%s3196_s0] sm:$0xff]  ;;  %2353 = vset.pattern.permute.xlu0 %v2548_v3  ;;  %2161 = vmatprep.subr.bf16.mxu0 %v2549_v4  ;;  %v65_v5 = vld [vmem:[%s3199_s3 + $0x8] sm:$0xff]  ;;  %v66_v6 = vld [vmem:[%s3199_s3 + $0x10] sm:$0xff] }
   0x2   :  { %v55_v1 = vld [vmem:[%s3197_s1] sm:$0xff]  ;;  %v67_v7 = vld [vmem:[%s3199_s3 + $0x18] sm:$0xff]  ;;  %52 = vperm.xlu0 %2353, %v50_v0  }
   0x3   :  { %v64_v2 = vld [vmem:[%s3199_s3] sm:$0xff]  ;;  %v56_v8 = vadd.s32 50, %v55_v1 }
   0x4   :  { %v2162_v9 = vpack.c.bf16 %v65_v5, %v64_v2 }
   0x5   :  { %21 = vsyncpa [#allocation5], 0  ;;  %v2165_v10 = vpack.c.bf16 %v67_v7, %v66_v6  ;;  %v2550_v11 = vmov 0.0   ;;  %v68_v12 = vld [vmem:[%s3199_s3 + $0x20] sm:$0xff]  ;;  %v69_v13 = vld [vmem:[%s3199_s3 + $0x28] sm:$0xff]  ;;  %vm2551_vm0 = vmmov 0   ;;  %v48_v30 = vlaneseq }
   0x6   :  { %2163 = vmatpush3.bf16.msra.mxu0 %v2162_v9  ;;  %238 = vmatprep.mubr.f32.mxu1 %v2550_v11  ;;  %v2168_v14 = vpack.c.bf16 %v69_v13, %v68_v12  ;;  %v70_v15 = vld [vmem:[%s3199_s3 + $0x30] sm:$0xff]  ;;  %v71_v16 = vld [vmem:[%s3199_s3 + $0x38] sm:$0x3f]  ;;  %v151_v17 = vld [vmem:[%s3200_s4 + $0x8] sm:$0xff]  ;;  %vm76_vm1 = vcmask 1045504   ;;  %vm2552_vm2 = vmmov 1  }
   0x7   :  { %2164 = vmatprep.subr.bf16.mxu0 %v2549_v4  ;;  %58 = vperm.xlu0 %2353, %v56_v8   ;;  %v153_v18 = vld [vmem:[%s3200_s4 + $0x18] sm:$0xff]  ;;  %v150_v19 = vld [vmem:[%s3200_s4] sm:$0xff]  ;;  %v152_v21 = vld [vmem:[%s3200_s4 + $0x10] sm:$0xff]  ;;  %v2171_v28 = vpack.c.bf16 %v71_v16, %v70_v15  ;;  %v2703_v32 = vand.u32 127, %v48_v30  ;;  %vm72_vm6 = vcmask 506880   ;;  %vm170_vm8 = vcmask 261120  }
   0x8   :  { %2103 = vmatprep.mubr.msk.f32.mxu0 %vm2551_vm0, %v2550_v11  ;;  %v2174_v20 = vpack.c.bf16 %v153_v18, %v151_v17  ;;  %v155_v22 = vld [vmem:[%s3200_s4 + $0x28] sm:$0xff]  ;;  %v157_v23 = vld [vmem:[%s3200_s4 + $0x38] sm:$0xff]  ;;  %v2176_v24 = vpack.c.bf16 %v152_v21, %v150_v19  ;;  %v154_v26 = vld [vmem:[%s3200_s4 + $0x20] sm:$0xff]  ;;  %v2804_v63 = vshrl.u32 %v48_v30, 7  ;;  %s2554_s0 = smov 32   ;;  %vm261_vm9 = vcmask 523264  }
   0x9   :  { %v2178_v25 = vpack.c.bf16 %v157_v23, %v155_v22  ;;  %v156_v27 = vld [vmem:[%s3200_s4 + $0x30] sm:$0xff]  ;;  %vm2172_vm3 = vmpackc.low %vm76_vm1, %vm2552_vm2  ;;  %v246_v35 = vld [vmem:[%s3202_s6 + $0x8] sm:$0xff]  ;;  %vm1414_vm10 = vcmask 1040384   ;;  %vm1416_vm11 = vcmask 1041408   ;;  %vm1418_vm12 = vcmask 1042432   ;;  %s2555_s26 = smov 96  }
   0xa   :  { %2166 = vmatpush3.bf16.msra.mxu0 %v2165_v10  ;;  %2175 = vmatprep.subr.bf16.mxu1 %v2174_v20  ;;  %v2180_v29 = vpack.c.bf16 %v156_v27, %v154_v26  ;;  %v248_v36 = vld [vmem:[%s3202_s6 + $0x18] sm:$0xff]  ;;  %v245_v38 = vld [vmem:[%s3202_s6] sm:$0xff]  ;;  %v247_v39 = vld [vmem:[%s3202_s6 + $0x10] sm:$0xff]  ;;  %v166_v0 = vsub.s32 1, %v2804_v63  ;;  %v162_v2 = vsub.s32 0, %v2804_v63  ;;  %vm1420_vm13 = vcmask 1043456  }
   0xb   :  { %2167 = vmatprep.subr.bf16.mxu0 %v2549_v4  ;;  %2177 = vmatpush1.bf16.msra.mxu1 %v2176_v24  ;;  %v2715_v37 = vpack.c.bf16 %v248_v36, %v246_v35  ;;  %v2723_v40 = vpack.c.bf16 %v247_v39, %v245_v38  ;;  %v250_v41 = vld [vmem:[%s3202_s6 + $0x28] sm:$0xff]  ;;  %v252_v42 = vld [vmem:[%s3202_s6 + $0x38] sm:$0xff]  ;;  %v249_v44 = vld [vmem:[%s3202_s6 + $0x20] sm:$0xff]  ;;  %vm1422_vm14 = vcmask 1044480   ;;  %vm1425_vm15 = vcmask 1046528   ;;  %s2557_s18 = smov 3  }
   0xc   :  { %2179 = vmatprep.subr.bf16.mxu1 %v2178_v25  ;;  %v2734_v43 = vpack.c.bf16 %v252_v42, %v250_v41  ;;  %v251_v45 = vld [vmem:[%s3202_s6 + $0x30] sm:$0xff]  ;;  %v254_v47 = vld [vmem:[%s3202_s6 + $0x48] sm:$0xff]  ;;  %v256_v48 = vld [vmem:[%s3202_s6 + $0x58] sm:$0xff]  ;;  %vm1794_vm2 = vcmask 64512   ;;  %s2558_s19 = smov 2   ;;  %s2559_s20 = smov 5  }
   0xd   :  { %v2742_v46 = vpack.c.bf16 %v251_v45, %v249_v44  ;;  %v2752_v49 = vpack.c.bf16 %v256_v48, %v254_v47  ;;  %v253_v50 = vld [vmem:[%s3202_s6 + $0x40] sm:$0xff]  ;;  %v255_v51 = vld [vmem:[%s3202_s6 + $0x50] sm:$0xff]  ;;  %v258_v53 = vld [vmem:[%s3202_s6 + $0x68] sm:$0xff]  ;;  %s2562_s3 = smov 6  }
   0xe   :  { %2169 = vmatpush3.bf16.msra.mxu0 %v2168_v14  ;;  %v2760_v52 = vpack.c.bf16 %v255_v51, %v253_v50  ;;  %v260_v54 = vld [vmem:[%s3202_s6 + $0x78] sm:$0xff]  ;;  %v257_v56 = vld [vmem:[%s3202_s6 + $0x60] sm:$0xff]  ;;  %v259_v57 = vld [vmem:[%s3202_s6 + $0x70] sm:$0xff] }
   0xf   :  { %2170 = vmatprep.subr.bf16.mxu0 %v2549_v4  ;;  %2181 = vmatpush1.bf16.msra.mxu1 %v2180_v29  ;;  %v2770_v55 = vpack.c.bf16 %v260_v54, %v258_v53  ;;  %v2778_v58 = vpack.c.bf16 %v259_v57, %v257_v56  ;;  %v158_v1 = vld [vmem:[%s3201_s5] sm:$0x3]  ;;  %s2553_s5 = smov 64  }
  0x10   :  { %2183 = vmatprep.subr.bf16.mxu1 %v2715_v37  ;;  %v167_v3 = vrot.slane %v158_v1, %v166_v0  ;;  %v163_v5 = vrot.slane %v158_v1, %v162_v2 }
  0x12   :  { %2173 = vmatpush3.bf16.msk.msra.mxu0 %vm2172_vm3, %v2171_v28  ;;  %vm1782_vm3 = vcmask 15360  }
  0x13   :  { %2199 = vmatprep.subr.bf16.mxu0 %v2715_v37 }
  0x81   :  { %v53_v31 = vpop.permute.xlu0 %52 }
  0x82   :  { %vm54_vm4 = vcmp.eq.s32.totalorder %v53_v31, %v2703_v32 }
  0x86   :  { %v59_v33 = vpop.permute.xlu0 %58 }
  0x87   :  { %vm60_vm5 = vcmp.eq.s32.totalorder %v59_v33, %v2703_v32 }
  0x88   :  { %vm61_vm7 = vmor %vm54_vm4, %vm60_vm5  ;;  %vm1784_vm4 = vcmask 23552   ;;  %vm1786_vm5 = vcmask 31744  }
  0x89   :  { %v2008_v34 = vsel %vm61_vm7, 1.0, %v2550_v11  ;;  %vm1790_vm7 = vcmask 48128  }
  0x8a   :  { %2104 = vmatmul.mubr.msk.f32.vlgmr.msra.gmra.mrb[0].mxu0 %vm72_vm6, %v2008_v34  ;;  %vm1788_vm6 = vcmask 39936  }
  0x8b   :  { %466 = vmatprep.mubr.f32.mxu0 %v2550_v11  ;;  %2201 = vmatpush1.bf16.msra.mxu0 %v2723_v40 }
  0x8c   :  { %2203 = vmatprep.subr.bf16.mxu0 %v2734_v43 }
  0x8f   :  { %2205 = vmatpush1.bf16.msra.mxu0 %v2742_v46 }
  0x90   :  { %2207 = vmatprep.subr.bf16.mxu0 %v2752_v49 }
  0x93   :  { %2209 = vmatpush1.bf16.msra.mxu0 %v2760_v52 }
  0x94   :  { %2211 = vmatprep.subr.bf16.mxu0 %v2770_v55 }
  0x97   :  { %2213 = vmatpush1.bf16.msra.mxu0 %v2778_v58 }
  0x98   :  { %2231 = vmatprep.subr.bf16.mxu0 %v2715_v37 }
 0x15d   :  { %v146_v59 = vpop.f32.mrb[0].mxu0 }
 0x15e   :  { %v2105_v60 = vpop.f32.mrb[1].mxu0  ;;  %2011 = vmatmul.mubr.msk.f32.vlgmr.msra.gmra.mrb[0].mxu1 %vm170_vm8, %v146_v59 }
 0x15f   :  { %2185 = vmatpush1.bf16.msra.mxu1 %v2723_v40  ;;  %329 = vmatprep.mubr.f32.mxu1 %v2550_v11 }
 0x160   :  { %2187 = vmatprep.subr.bf16.mxu1 %v2734_v43 }
 0x163   :  { %2189 = vmatpush1.bf16.msra.mxu1 %v2742_v46 }
 0x164   :  { %2191 = vmatprep.subr.bf16.mxu1 %v2752_v49 }
 0x167   :  { %2193 = vmatpush1.bf16.msra.mxu1 %v2760_v52 }
 0x168   :  { %2195 = vmatprep.subr.bf16.mxu1 %v2770_v55 }
 0x16b   :  { %2197 = vmatpush1.bf16.msra.mxu1 %v2778_v58 }
 0x16c   :  { %2215 = vmatprep.subr.bf16.mxu1 %v2715_v37 }
 0x16e   :  { %330 = vmatmul.mubr.f32.vlgmr.msra.gmra.mrb[2].mxu1 %v2550_v11 }
 0x16f   :  { %2217 = vmatpush1.bf16.msra.mxu1 %v2723_v40  ;;  %613 = vmatprep.mubr.f32.mxu1 %v2550_v11 }
 0x170   :  { %2219 = vmatprep.subr.bf16.mxu1 %v2734_v43 }
 0x173   :  { %2221 = vmatpush1.bf16.msra.mxu1 %v2742_v46 }
 0x174   :  { %2223 = vmatprep.subr.bf16.mxu1 %v2752_v49 }
 0x177   :  { %2225 = vmatpush1.bf16.msra.mxu1 %v2760_v52 }
 0x178   :  { %2227 = vmatprep.subr.bf16.mxu1 %v2770_v55 }
 0x17b   :  { %2229 = vmatpush1.bf16.msra.mxu1 %v2778_v58 }
 0x17c   :  { %2247 = vmatprep.subr.bf16.mxu1 %v2715_v37 }
 0x231   :  { %v240_v61 = vpop.f32.mrb[0].mxu1 }
 0x232   :  { %v242_v62 = vpop.f32.mrb[1].mxu1  ;;  %v2817_v10 = vadd.f32 %v240_v61, %v163_v5 }
 0x233   :  { %v2815_v8 = vadd.f32 %v242_v62, %v167_v3 }
 0x241   :  { %v331_v6 = vpop.f32.mrb[2].mxu1 }
 0x242   :  { %v333_v7 = vpop.f32.mrb[3].mxu1  ;;  %v336_v13 = vadd.f32 %v331_v6, %v2817_v10 }
 0x243   :  { %v338_v9 = vrot.slane %v333_v7, 1 }
 0x244   :  { %v2012_v17 = vmul.f32 -1.442695, %v336_v13 }
 0x245   :  { %v340_v12 = vadd.f32 %v338_v9, %v2815_v8 }
 0x247   :  { %2354 = vtanh.f32 %v340_v12  ;;  %v2013_v16 = vmul.f32 -1.442695, %v340_v12 }
 0x248   :  { %2356 = vtanh.f32 %v336_v13 }
 0x249   :  { %2358 = vpow2.f32 %v2013_v16 }
 0x24a   :  { %2360 = vpow2.f32 %v2012_v17 }
 0x251   :  { %v2355_v14 = vpop.eup %2354 }
 0x252   :  { %374 = vrot.lane.b32.xlu1 %v2355_v14, %s2553_s5  ;;  %v2357_v15 = vpop.eup %2356 }
 0x253   :  { %v2359_v18 = vpop.eup %2358 }
 0x254   :  { %v368_v19 = vadd.f32 1.0, %v2359_v18  ;;  %v2361_v20 = vpop.eup %2360 }
 0x255   :  { %v344_v21 = vadd.f32 1.0, %v2361_v20 }
 0x256   :  { %350 = vrot.lane.b32.xlu1 %v2357_v15, %s2553_s5  ;;  %2362 = vrcp.f32 %v368_v19 }
 0x257   :  { %2364 = vrcp.f32 %v344_v21 }
 0x260   :  { %v2363_v22 = vpop.eup %2362 }
 0x261   :  { %v2365_v25 = vpop.eup %2364  ;;  %v372_v28 = vmul.f32 0.0, %v2363_v22 }
 0x262   :  { %v348_v31 = vmul.f32 0.0, %v2365_v25 }
 0x2c4   :  { %v375_v23 = vpop.permute.xlu1 %374 }
 0x2c5   :  { %v377_v24 = vmul.f32 %v2363_v22, %v375_v23 }
 0x2c7   :  { %379 = vrot.lane.b32.xlu0 %v377_v24, %s2554_s0 }
 0x2c8   :  { %v351_v26 = vpop.permute.xlu1 %350 }
 0x2c9   :  { %v353_v27 = vmul.f32 %v2365_v25, %v351_v26 }
 0x2cb   :  { %355 = vrot.lane.b32.xlu1 %v353_v27, %s2554_s0 }
 0x339   :  { %v380_v29 = vpop.permute.xlu0 %379 }
 0x33a   :  { %v2825_v30 = vadd.f32 %v380_v29, %v372_v28 }
 0x33c   :  { %2366 = vtanh.f32 %v2825_v30  ;;  %v516_v17 = vrot.slane %v2825_v30, 1 }
 0x33d   :  { %v356_v33 = vpop.permute.xlu1 %355 }
 0x33e   :  { %v358_v34 = vadd.f32 %v356_v33, %v348_v31 }
 0x340   :  { %2368 = vtanh.f32 %v358_v34  ;;  %v489_v16 = vrot.slane %v358_v34, 7 }
 0x346   :  { %v2367_v35 = vpop.eup %2366 }
 0x347   :  { %385 = vrot.lane.b32.xlu0 %v2367_v35, %s2553_s5 }
 0x34a   :  { %v2369_v36 = vpop.eup %2368 }
 0x34b   :  { %361 = vrot.lane.b32.xlu1 %v2369_v36, %s2553_s5 }
 0x3b9   :  { %v386_v38 = vpop.permute.xlu0 %385 }
 0x3ba   :  { %v2830_v39 = vmul.f32 %v2363_v22, %v386_v38 }
 0x3bc   :  { %v394_v41 = vrot.slane %v2830_v39, 7 }
 0x3bd   :  { %v362_v42 = vpop.permute.xlu1 %361 }
 0x3be   :  { %v2833_v44 = vmul.f32 %v2365_v25, %v362_v42  ;;  %395 = vrot.lane.b32.xlu1 %v394_v41, %s2553_s5 }
 0x3c0   :  { %390 = vrot.lane.b32.xlu0 %v2833_v44, %s2554_s0 }
 0x430   :  { %v396_v45 = vpop.permute.xlu1 %395 }
 0x432   :  { %v391_v47 = vpop.permute.xlu0 %390 }
 0x433   :  { %v398_v48 = vsel %vm170_vm8, %v391_v47, %v396_v45 }
 0x434   :  { %2014 = vmatmul.mubr.msk.f32.vlgmr.msra.gmra.mrb[2].mxu0 %vm261_vm9, %v398_v48 }
 0x435   :  { %2233 = vmatpush1.bf16.msra.mxu0 %v2723_v40  ;;  %760 = vmatprep.mubr.f32.mxu0 %v2550_v11 }
 0x436   :  { %2235 = vmatprep.subr.bf16.mxu0 %v2734_v43 }
 0x439   :  { %2237 = vmatpush1.bf16.msra.mxu0 %v2742_v46 }
 0x43a   :  { %2239 = vmatprep.subr.bf16.mxu0 %v2752_v49 }
 0x43d   :  { %2241 = vmatpush1.bf16.msra.mxu0 %v2760_v52 }
 0x43e   :  { %2243 = vmatprep.subr.bf16.mxu0 %v2770_v55 }
 0x441   :  { %2245 = vmatpush1.bf16.msra.mxu0 %v2778_v58 }
 0x442   :  { %2263 = vmatprep.subr.bf16.mxu0 %v2715_v37 }
 0x507   :  { %v468_v50 = vpop.f32.mrb[2].mxu0 }
 0x508   :  { %v474_v51 = vrot.slane %v468_v50, 7  ;;  %v470_v53 = vpop.f32.mrb[3].mxu0 }
 0x509   :  { %v478_v54 = vrot.slane %v470_v53, 2 }
 0x50a   :  { %v476_v56 = vadd.f32 %v474_v51, %v2817_v10 }
 0x50b   :  { %v480_v57 = vadd.f32 %v478_v54, %v2815_v8 }
 0x50c   :  { %2370 = vtanh.f32 %v476_v56  ;;  %v2015_v61 = vmul.f32 -1.442695, %v476_v56 }
 0x50d   :  { %2372 = vtanh.f32 %v480_v57  ;;  %v2016_v62 = vmul.f32 -1.442695, %v480_v57 }
 0x50e   :  { %2374 = vpow2.f32 %v2015_v61 }
 0x50f   :  { %2376 = vpow2.f32 %v2016_v62 }
 0x516   :  { %v2371_v59 = vpop.eup %2370 }
 0x517   :  { %v2373_v60 = vpop.eup %2372  ;;  %493 = vrot.lane.b32.xlu1 %v2371_v59, %s2553_s5 }
 0x518   :  { %520 = vrot.lane.b32.xlu0 %v2373_v60, %s2553_s5  ;;  %v2375_v1 = vpop.eup %2374 }
 0x519   :  { %v2377_v3 = vpop.eup %2376  ;;  %v484_v5 = vadd.f32 1.0, %v2375_v1 }
 0x51a   :  { %v511_v6 = vadd.f32 1.0, %v2377_v3 }
 0x51b   :  { %2378 = vrcp.f32 %v484_v5 }
 0x51c   :  { %2380 = vrcp.f32 %v511_v6 }
 0x525   :  { %v2379_v7 = vpop.eup %2378 }
 0x526   :  { %v2381_v12 = vpop.eup %2380  ;;  %v491_v18 = vmul.f32 %v2379_v7, %v489_v16 }
 0x527   :  { %v518_v20 = vmul.f32 %v2381_v12, %v516_v17 }
 0x589   :  { %v494_v9 = vpop.permute.xlu1 %493 }
 0x58a   :  { %v496_v13 = vmul.f32 %v2379_v7, %v494_v9  ;;  %v521_v14 = vpop.permute.xlu0 %520 }
 0x58b   :  { %v523_v15 = vmul.f32 %v2381_v12, %v521_v14 }
 0x58c   :  { %498 = vrot.lane.b32.xlu1 %v496_v13, %s2554_s0 }
 0x58d   :  { %525 = vrot.lane.b32.xlu0 %v523_v15, %s2554_s0 }
 0x5fe   :  { %v499_v19 = vpop.permute.xlu1 %498 }
 0x5ff   :  { %v2856_v21 = vadd.f32 %v499_v19, %v491_v18  ;;  %v526_v22 = vpop.permute.xlu0 %525 }
 0x600   :  { %v2858_v23 = vadd.f32 %v526_v22, %v518_v20 }
 0x601   :  { %2382 = vtanh.f32 %v2856_v21  ;;  %v636_v6 = vrot.slane %v2856_v21, 7 }
 0x602   :  { %2384 = vtanh.f32 %v2858_v23 }
 0x60b   :  { %v2383_v24 = vpop.eup %2382 }
 0x60c   :  { %v2385_v25 = vpop.eup %2384  ;;  %504 = vrot.lane.b32.xlu1 %v2383_v24, %s2553_s5 }
 0x60d   :  { %531 = vrot.lane.b32.xlu0 %v2385_v25, %s2553_s5 }
 0x67e   :  { %v505_v26 = vpop.permute.xlu1 %504 }
 0x67f   :  { %v2864_v27 = vmul.f32 %v2379_v7, %v505_v26  ;;  %v532_v28 = vpop.permute.xlu0 %531  ;;  %v663_v7 = vrot.slane %v2858_v23, 1 }
 0x680   :  { %v2866_v29 = vmul.f32 %v2381_v12, %v532_v28 }
 0x681   :  { %536 = vrot.lane.b32.xlu0 %v2864_v27, %s2554_s0  ;;  %v1415_v22 = vsel %vm1414_vm10, %v2833_v44, %v2864_v27 }
 0x682   :  { %v540_v30 = vrot.slane %v2866_v29, 5 }
 0x684   :  { %541 = vrot.lane.b32.xlu1 %v540_v30, %s2553_s5 }
 0x6f3   :  { %v537_v31 = vpop.permute.xlu0 %536 }
 0x6f6   :  { %v542_v33 = vpop.permute.xlu1 %541 }
 0x6f7   :  { %v544_v34 = vsel %vm170_vm8, %v537_v31, %v542_v33 }
 0x6f8   :  { %v546_v35 = vrot.slane %v544_v34, 1 }
 0x6fa   :  { %2017 = vmatmul.mubr.msk.f32.vlgmr.msra.gmra.mrb[4].mxu1 %vm261_vm9, %v546_v35 }
 0x6fb   :  { %2249 = vmatpush1.bf16.msra.mxu1 %v2723_v40  ;;  %907 = vmatprep.mubr.f32.mxu1 %v2550_v11 }
 0x6fc   :  { %2251 = vmatprep.subr.bf16.mxu1 %v2734_v43 }
 0x6ff   :  { %2253 = vmatpush1.bf16.msra.mxu1 %v2742_v46 }
 0x700   :  { %2255 = vmatprep.subr.bf16.mxu1 %v2752_v49 }
 0x703   :  { %2257 = vmatpush1.bf16.msra.mxu1 %v2760_v52 }
 0x704   :  { %2259 = vmatprep.subr.bf16.mxu1 %v2770_v55 }
 0x707   :  { %2261 = vmatpush1.bf16.msra.mxu1 %v2778_v58 }
 0x708   :  { %2279 = vmatprep.subr.bf16.mxu1 %v2715_v37 }
 0x7cd   :  { %v615_v36 = vpop.f32.mrb[4].mxu1 }
 0x7ce   :  { %v621_v38 = vrot.slane %v615_v36, 6  ;;  %v617_v41 = vpop.f32.mrb[5].mxu1 }
 0x7cf   :  { %v625_v42 = vrot.slane %v617_v41, 3 }
 0x7d0   :  { %v623_v45 = vadd.f32 %v621_v38, %v2817_v10 }
 0x7d1   :  { %v627_v47 = vadd.f32 %v625_v42, %v2815_v8 }
 0x7d2   :  { %2386 = vtanh.f32 %v623_v45  ;;  %v2018_v51 = vmul.f32 -1.442695, %v623_v45 }
 0x7d3   :  { %2388 = vtanh.f32 %v627_v47  ;;  %v2019_v53 = vmul.f32 -1.442695, %v627_v47 }
 0x7d4   :  { %2390 = vpow2.f32 %v2018_v51 }
 0x7d5   :  { %2392 = vpow2.f32 %v2019_v53 }
 0x7dc   :  { %v2387_v48 = vpop.eup %2386 }
 0x7dd   :  { %v2389_v50 = vpop.eup %2388  ;;  %640 = vrot.lane.b32.xlu1 %v2387_v48, %s2553_s5 }
 0x7de   :  { %667 = vrot.lane.b32.xlu0 %v2389_v50, %s2553_s5  ;;  %v2391_v54 = vpop.eup %2390 }
 0x7df   :  { %v2393_v56 = vpop.eup %2392  ;;  %v631_v57 = vadd.f32 1.0, %v2391_v54 }
 0x7e0   :  { %v658_v59 = vadd.f32 1.0, %v2393_v56 }
 0x7e1   :  { %2394 = vrcp.f32 %v631_v57 }
 0x7e2   :  { %2396 = vrcp.f32 %v658_v59 }
 0x7eb   :  { %v2395_v60 = vpop.eup %2394 }
 0x7ec   :  { %v2397_v62 = vpop.eup %2396  ;;  %v638_v9 = vmul.f32 %v2395_v60, %v636_v6 }
 0x7ed   :  { %v665_v13 = vmul.f32 %v2397_v62, %v663_v7 }
 0x84f   :  { %v641_v61 = vpop.permute.xlu1 %640 }
 0x850   :  { %v643_v1 = vmul.f32 %v2395_v60, %v641_v61  ;;  %v668_v3 = vpop.permute.xlu0 %667 }
 0x851   :  { %v670_v5 = vmul.f32 %v2397_v62, %v668_v3 }
 0x852   :  { %645 = vrot.lane.b32.xlu1 %v643_v1, %s2554_s0 }
 0x853   :  { %672 = vrot.lane.b32.xlu0 %v670_v5, %s2554_s0 }
 0x8c4   :  { %v646_v12 = vpop.permute.xlu1 %645 }
 0x8c5   :  { %v2891_v14 = vadd.f32 %v646_v12, %v638_v9  ;;  %v673_v15 = vpop.permute.xlu0 %672 }
 0x8c6   :  { %v2893_v16 = vadd.f32 %v673_v15, %v665_v13 }
 0x8c7   :  { %2398 = vtanh.f32 %v2891_v14 }
 0x8c8   :  { %2400 = vtanh.f32 %v2893_v16  ;;  %v810_v61 = vrot.slane %v2893_v16, 1 }
 0x8d1   :  { %v2399_v17 = vpop.eup %2398 }
 0x8d2   :  { %v2401_v18 = vpop.eup %2400  ;;  %651 = vrot.lane.b32.xlu1 %v2399_v17, %s2553_s5 }
 0x8d3   :  { %678 = vrot.lane.b32.xlu0 %v2401_v18, %s2553_s5 }
 0x944   :  { %v652_v19 = vpop.permute.xlu1 %651 }
 0x945   :  { %v654_v20 = vmul.f32 %v2395_v60, %v652_v19  ;;  %v679_v21 = vpop.permute.xlu0 %678  ;;  %v783_v60 = vrot.slane %v2891_v14, 7 }
 0x946   :  { %v2902_v23 = vmul.f32 %v2397_v62, %v679_v21 }
 0x947   :  { %v2905_v24 = vsel %vm1416_vm11, %v1415_v22, %v654_v20  ;;  %683 = vrot.lane.b32.xlu0 %v654_v20, %s2554_s0 }
 0x948   :  { %v687_v25 = vrot.slane %v2902_v23, 3 }
 0x94a   :  { %688 = vrot.lane.b32.xlu1 %v687_v25, %s2553_s5 }
 0x9b9   :  { %v684_v26 = vpop.permute.xlu0 %683 }
 0x9bc   :  { %v689_v28 = vpop.permute.xlu1 %688 }
 0x9bd   :  { %v691_v30 = vsel %vm170_vm8, %v684_v26, %v689_v28 }
 0x9be   :  { %v693_v31 = vrot.slane %v691_v30, 2 }
 0x9c0   :  { %2020 = vmatmul.mubr.msk.f32.vlgmr.msra.gmra.mrb[4].mxu0 %vm261_vm9, %v693_v31 }
 0x9c1   :  { %2265 = vmatpush1.bf16.msra.mxu0 %v2723_v40  ;;  %1054 = vmatprep.mubr.f32.mxu0 %v2550_v11 }
 0x9c2   :  { %2267 = vmatprep.subr.bf16.mxu0 %v2734_v43 }
 0x9c5   :  { %2269 = vmatpush1.bf16.msra.mxu0 %v2742_v46 }
 0x9c6   :  { %2271 = vmatprep.subr.bf16.mxu0 %v2752_v49 }
 0x9c9   :  { %2273 = vmatpush1.bf16.msra.mxu0 %v2760_v52 }
 0x9ca   :  { %2275 = vmatprep.subr.bf16.mxu0 %v2770_v55 }
 0x9cd   :  { %2277 = vmatpush1.bf16.msra.mxu0 %v2778_v58 }
 0x9ce   :  { %2295 = vmatprep.subr.bf16.mxu0 %v2715_v37 }
 0xa93   :  { %v762_v44 = vpop.f32.mrb[4].mxu0 }
 0xa94   :  { %v768_v27 = vrot.slane %v762_v44, 5  ;;  %v764_v33 = vpop.f32.mrb[5].mxu0 }
 0xa95   :  { %v772_v34 = vrot.slane %v764_v33, 4 }
 0xa96   :  { %v770_v35 = vadd.f32 %v768_v27, %v2817_v10 }
 0xa97   :  { %v774_v36 = vadd.f32 %v772_v34, %v2815_v8 }
 0xa98   :  { %2402 = vtanh.f32 %v770_v35  ;;  %v2021_v42 = vmul.f32 -1.442695, %v770_v35 }
 0xa99   :  { %2404 = vtanh.f32 %v774_v36  ;;  %v2022_v45 = vmul.f32 -1.442695, %v774_v36 }
 0xa9a   :  { %2406 = vpow2.f32 %v2021_v42 }
 0xa9b   :  { %2408 = vpow2.f32 %v2022_v45 }
 0xaa2   :  { %v2403_v38 = vpop.eup %2402 }
 0xaa3   :  { %v2405_v41 = vpop.eup %2404  ;;  %787 = vrot.lane.b32.xlu1 %v2403_v38, %s2553_s5 }
 0xaa4   :  { %814 = vrot.lane.b32.xlu0 %v2405_v41, %s2553_s5  ;;  %v2407_v37 = vpop.eup %2406 }
 0xaa5   :  { %v2409_v47 = vpop.eup %2408  ;;  %v778_v48 = vadd.f32 1.0, %v2407_v37 }
 0xaa6   :  { %v805_v50 = vadd.f32 1.0, %v2409_v47 }
 0xaa7   :  { %2410 = vrcp.f32 %v778_v48 }
 0xaa8   :  { %2412 = vrcp.f32 %v805_v50 }
 0xab1   :  { %v2411_v51 = vpop.eup %2410 }
 0xab2   :  { %v2413_v54 = vpop.eup %2412  ;;  %v785_v62 = vmul.f32 %v2411_v51, %v783_v60 }
 0xab3   :  { %v812_v3 = vmul.f32 %v2413_v54, %v810_v61 }
 0xb15   :  { %v788_v53 = vpop.permute.xlu1 %787 }
 0xb16   :  { %v790_v56 = vmul.f32 %v2411_v51, %v788_v53  ;;  %v815_v57 = vpop.permute.xlu0 %814 }
 0xb17   :  { %v817_v59 = vmul.f32 %v2413_v54, %v815_v57 }
 0xb18   :  { %792 = vrot.lane.b32.xlu1 %v790_v56, %s2554_s0 }
 0xb19   :  { %819 = vrot.lane.b32.xlu0 %v817_v59, %s2554_s0 }
 0xb8a   :  { %v793_v1 = vpop.permute.xlu1 %792 }
 0xb8b   :  { %v2929_v5 = vadd.f32 %v793_v1, %v785_v62  ;;  %v820_v6 = vpop.permute.xlu0 %819 }
 0xb8c   :  { %v2931_v7 = vadd.f32 %v820_v6, %v812_v3 }
 0xb8d   :  { %2414 = vtanh.f32 %v2929_v5 }
 0xb8e   :  { %2416 = vtanh.f32 %v2931_v7  ;;  %v957_v53 = vrot.slane %v2931_v7, 1 }
 0xb97   :  { %v2415_v9 = vpop.eup %2414 }
 0xb98   :  { %v2417_v12 = vpop.eup %2416  ;;  %798 = vrot.lane.b32.xlu1 %v2415_v9, %s2553_s5 }
 0xb99   :  { %825 = vrot.lane.b32.xlu0 %v2417_v12, %s2553_s5 }
 0xc0a   :  { %v799_v13 = vpop.permute.xlu1 %798 }
 0xc0b   :  { %v801_v14 = vmul.f32 %v2411_v51, %v799_v13  ;;  %v826_v15 = vpop.permute.xlu0 %825  ;;  %v930_v51 = vrot.slane %v2929_v5, 7 }
 0xc0c   :  { %v2937_v16 = vmul.f32 %v2413_v54, %v826_v15 }
 0xc0d   :  { %v2941_v17 = vsel %vm1418_vm12, %v2905_v24, %v801_v14  ;;  %830 = vrot.lane.b32.xlu0 %v801_v14, %s2554_s0 }
 0xc0e   :  { %v834_v18 = vrot.slane %v2937_v16, 1 }
 0xc10   :  { %835 = vrot.lane.b32.xlu1 %v834_v18, %s2553_s5 }
 0xc7f   :  { %v831_v19 = vpop.permute.xlu0 %830 }
 0xc82   :  { %v836_v20 = vpop.permute.xlu1 %835 }
 0xc83   :  { %v838_v21 = vsel %vm170_vm8, %v831_v19, %v836_v20 }
 0xc84   :  { %v840_v22 = vrot.slane %v838_v21, 3 }
 0xc86   :  { %2023 = vmatmul.mubr.msk.f32.vlgmr.msra.gmra.mrb[6].mxu1 %vm261_vm9, %v840_v22 }
 0xc87   :  { %2281 = vmatpush1.bf16.msra.mxu1 %v2723_v40  ;;  %1201 = vmatprep.mubr.f32.mxu1 %v2550_v11 }
 0xc88   :  { %2283 = vmatprep.subr.bf16.mxu1 %v2734_v43 }
 0xc8b   :  { %2285 = vmatpush1.bf16.msra.mxu1 %v2742_v46 }
 0xc8c   :  { %2287 = vmatprep.subr.bf16.mxu1 %v2752_v49 }
 0xc8f   :  { %2289 = vmatpush1.bf16.msra.mxu1 %v2760_v52 }
 0xc90   :  { %2291 = vmatprep.subr.bf16.mxu1 %v2770_v55 }
 0xc93   :  { %2293 = vmatpush1.bf16.msra.mxu1 %v2778_v58 }
 0xc94   :  { %2310 = vmatprep.subr.bf16.mxu1 %v2549_v4 }
 0xd59   :  { %v909_v24 = vpop.f32.mrb[6].mxu1 }
 0xd5a   :  { %v915_v25 = vrot.slane %v909_v24, 4  ;;  %v911_v26 = vpop.f32.mrb[7].mxu1 }
 0xd5b   :  { %v919_v28 = vrot.slane %v911_v26, 5 }
 0xd5c   :  { %v917_v30 = vadd.f32 %v915_v25, %v2817_v10 }
 0xd5d   :  { %v921_v31 = vadd.f32 %v919_v28, %v2815_v8 }
 0xd5e   :  { %2418 = vtanh.f32 %v917_v30  ;;  %v2024_v33 = vmul.f32 -1.442695, %v917_v30 }
 0xd5f   :  { %2420 = vtanh.f32 %v921_v31  ;;  %v2025_v34 = vmul.f32 -1.442695, %v921_v31 }
 0xd60   :  { %2422 = vpow2.f32 %v2024_v33 }
 0xd61   :  { %2424 = vpow2.f32 %v2025_v34 }
 0xd68   :  { %v2419_v44 = vpop.eup %2418 }
 0xd69   :  { %v2421_v27 = vpop.eup %2420  ;;  %934 = vrot.lane.b32.xlu1 %v2419_v44, %s2553_s5 }
 0xd6a   :  { %961 = vrot.lane.b32.xlu0 %v2421_v27, %s2553_s5  ;;  %v2423_v35 = vpop.eup %2422 }
 0xd6b   :  { %v2425_v36 = vpop.eup %2424  ;;  %v925_v38 = vadd.f32 1.0, %v2423_v35 }
 0xd6c   :  { %v952_v41 = vadd.f32 1.0, %v2425_v36 }
 0xd6d   :  { %2426 = vrcp.f32 %v925_v38 }
 0xd6e   :  { %2428 = vrcp.f32 %v952_v41 }
 0xd77   :  { %v2427_v42 = vpop.eup %2426 }
 0xd78   :  { %v2429_v37 = vpop.eup %2428  ;;  %v932_v54 = vmul.f32 %v2427_v42, %v930_v51 }
 0xd79   :  { %v959_v57 = vmul.f32 %v2429_v37, %v957_v53 }
 0xddb   :  { %v935_v45 = vpop.permute.xlu1 %934 }
 0xddc   :  { %v937_v47 = vmul.f32 %v2427_v42, %v935_v45  ;;  %v962_v48 = vpop.permute.xlu0 %961 }
 0xddd   :  { %v964_v50 = vmul.f32 %v2429_v37, %v962_v48 }
 0xdde   :  { %939 = vrot.lane.b32.xlu1 %v937_v47, %s2554_s0 }
 0xddf   :  { %966 = vrot.lane.b32.xlu0 %v964_v50, %s2554_s0 }
 0xe50   :  { %v940_v56 = vpop.permute.xlu1 %939 }
 0xe51   :  { %v2965_v59 = vadd.f32 %v940_v56, %v932_v54  ;;  %v967_v60 = vpop.permute.xlu0 %966 }
 0xe52   :  { %v2967_v61 = vadd.f32 %v967_v60, %v959_v57 }
 0xe53   :  { %2430 = vtanh.f32 %v2965_v59  ;;  %v1077_v33 = vrot.slane %v2965_v59, 7 }
 0xe54   :  { %2432 = vtanh.f32 %v2967_v61  ;;  %v1104_v34 = vrot.slane %v2967_v61, 1 }
 0xe5d   :  { %v2431_v62 = vpop.eup %2430 }
 0xe5e   :  { %v2433_v1 = vpop.eup %2432  ;;  %945 = vrot.lane.b32.xlu1 %v2431_v62, %s2553_s5 }
 0xe5f   :  { %972 = vrot.lane.b32.xlu0 %v2433_v1, %s2553_s5 }
 0xed0   :  { %v946_v3 = vpop.permute.xlu1 %945 }
 0xed1   :  { %v948_v5 = vmul.f32 %v2427_v42, %v946_v3  ;;  %v973_v6 = vpop.permute.xlu0 %972 }
 0xed2   :  { %v2973_v7 = vmul.f32 %v2429_v37, %v973_v6 }
 0xed3   :  { %v2977_v9 = vsel %vm1420_vm13, %v2941_v17, %v948_v5  ;;  %977 = vrot.lane.b32.xlu0 %v948_v5, %s2554_s0 }
 0xed4   :  { %v981_v12 = vrot.slane %v2973_v7, 7 }
 0xed6   :  { %982 = vrot.lane.b32.xlu1 %v981_v12, %s2553_s5 }
 0xf45   :  { %v978_v13 = vpop.permute.xlu0 %977 }
 0xf48   :  { %v983_v14 = vpop.permute.xlu1 %982 }
 0xf49   :  { %v985_v15 = vsel %vm170_vm8, %v978_v13, %v983_v14 }
 0xf4a   :  { %v987_v18 = vrot.slane %v985_v15, 4 }
 0xf4c   :  { %2026 = vmatmul.mubr.msk.f32.vlgmr.msra.gmra.mrb[6].mxu0 %vm261_vm9, %v987_v18 }
 0xf4d   :  { %2297 = vmatpush1.bf16.msra.mxu0 %v2723_v40  ;;  %1348 = vmatprep.mubr.f32.mxu0 %v2550_v11 }
 0xf4e   :  { %2299 = vmatprep.subr.bf16.mxu0 %v2734_v43 }
 0xf51   :  { %2301 = vmatpush1.bf16.msra.mxu0 %v2742_v46 }
 0xf52   :  { %2303 = vmatprep.subr.bf16.mxu0 %v2752_v49 }
 0xf55   :  { %2305 = vmatpush1.bf16.msra.mxu0 %v2760_v52 }
 0xf56   :  { %2307 = vmatprep.subr.bf16.mxu0 %v2770_v55 }
 0xf59   :  { %2309 = vmatpush1.bf16.msra.mxu0 %v2778_v58 }
0x101f   :  { %v1056_v17 = vpop.f32.mrb[6].mxu0 }
0x1020   :  { %v1062_v19 = vrot.slane %v1056_v17, 3  ;;  %v1058_v20 = vpop.f32.mrb[7].mxu0 }
0x1021   :  { %v1066_v21 = vrot.slane %v1058_v20, 6 }
0x1022   :  { %v1064_v40 = vadd.f32 %v1062_v19, %v2817_v10 }
0x1023   :  { %v1068_v22 = vadd.f32 %v1066_v21, %v2815_v8 }
0x1024   :  { %2434 = vtanh.f32 %v1064_v40  ;;  %v2027_v49 = vmul.f32 -1.442695, %v1064_v40 }
0x1025   :  { %2436 = vtanh.f32 %v1068_v22  ;;  %v2028_v52 = vmul.f32 -1.442695, %v1068_v22 }
0x1026   :  { %2438 = vpow2.f32 %v2027_v49 }
0x1027   :  { %2440 = vpow2.f32 %v2028_v52 }
0x102e   :  { %v2435_v43 = vpop.eup %2434 }
0x102f   :  { %v2437_v46 = vpop.eup %2436  ;;  %1081 = vrot.lane.b32.xlu1 %v2435_v43, %s2553_s5 }
0x1030   :  { %1108 = vrot.lane.b32.xlu0 %v2437_v46, %s2553_s5  ;;  %v2439_v55 = vpop.eup %2438 }
0x1031   :  { %v2441_v58 = vpop.eup %2440  ;;  %v1072_v24 = vadd.f32 1.0, %v2439_v55 }
0x1032   :  { %v1099_v25 = vadd.f32 1.0, %v2441_v58 }
0x1033   :  { %2442 = vrcp.f32 %v1072_v24 }
0x1034   :  { %2444 = vrcp.f32 %v1099_v25 }
0x103d   :  { %v2443_v26 = vpop.eup %2442 }
0x103e   :  { %v2445_v30 = vpop.eup %2444  ;;  %v1079_v35 = vmul.f32 %v2443_v26, %v1077_v33 }
0x103f   :  { %v1106_v38 = vmul.f32 %v2445_v30, %v1104_v34 }
0x10a1   :  { %v1082_v28 = vpop.permute.xlu1 %1081 }
0x10a2   :  { %v1084_v31 = vmul.f32 %v2443_v26, %v1082_v28  ;;  %v1109_v44 = vpop.permute.xlu0 %1108 }
0x10a3   :  { %v1111_v27 = vmul.f32 %v2445_v30, %v1109_v44 }
0x10a4   :  { %1086 = vrot.lane.b32.xlu1 %v1084_v31, %s2554_s0 }
0x10a5   :  { %1113 = vrot.lane.b32.xlu0 %v1111_v27, %s2554_s0 }
0x1116   :  { %v1087_v36 = vpop.permute.xlu1 %1086 }
0x1117   :  { %v1089_v41 = vadd.f32 %v1087_v36, %v1079_v35  ;;  %v1114_v42 = vpop.permute.xlu0 %1113 }
0x1118   :  { %v1116_v45 = vadd.f32 %v1114_v42, %v1106_v38 }
0x1119   :  { %2446 = vtanh.f32 %v1089_v41  ;;  %v1224_v52 = vrot.slane %v1089_v41, 7 }
0x111a   :  { %2448 = vtanh.f32 %v1116_v45  ;;  %v1251_v55 = vrot.slane %v1116_v45, 1 }
0x1123   :  { %v2447_v37 = vpop.eup %2446 }
0x1124   :  { %v2449_v47 = vpop.eup %2448  ;;  %1092 = vrot.lane.b32.xlu1 %v2447_v37, %s2553_s5 }
0x1125   :  { %1119 = vrot.lane.b32.xlu0 %v2449_v47, %s2553_s5 }
0x1196   :  { %v1093_v48 = vpop.permute.xlu1 %1092 }
0x1197   :  { %v1095_v50 = vmul.f32 %v2443_v26, %v1093_v48  ;;  %v1120_v51 = vpop.permute.xlu0 %1119 }
0x1198   :  { %v3002_v53 = vmul.f32 %v2445_v30, %v1120_v51 }
0x1199   :  { %v1423_v54 = vsel %vm1422_vm14, %v2977_v9, %v1095_v50  ;;  %1124 = vrot.lane.b32.xlu0 %v1095_v50, %s2554_s0 }
0x119a   :  { %v1128_v56 = vrot.slane %v3002_v53, 5 }
0x119c   :  { %1129 = vrot.lane.b32.xlu1 %v1128_v56, %s2553_s5 }
0x120b   :  { %v1125_v57 = vpop.permute.xlu0 %1124 }
0x120e   :  { %v1130_v59 = vpop.permute.xlu1 %1129 }
0x120f   :  { %v1132_v60 = vsel %vm170_vm8, %v1125_v57, %v1130_v59 }
0x1210   :  { %v1134_v61 = vrot.slane %v1132_v60, 5 }
0x1212   :  { %2029 = vmatmul.mubr.msk.f32.vlgmr.msra.gmra.mrb[8].mxu1 %vm261_vm9, %v1134_v61 }
0x1213   :  { %2122 = vmatprep.mubr.msk.f32.mxu1 %vm2551_vm0, %v2550_v11 }
0x12e5   :  { %v1203_v62 = vpop.f32.mrb[8].mxu1 }
0x12e6   :  { %v1209_v1 = vrot.slane %v1203_v62, 2  ;;  %v1205_v3 = vpop.f32.mrb[9].mxu1 }
0x12e7   :  { %v1213_v5 = vrot.slane %v1205_v3, 7 }
0x12e8   :  { %v1211_v6 = vadd.f32 %v1209_v1, %v2817_v10 }
0x12e9   :  { %v1215_v9 = vadd.f32 %v1213_v5, %v2815_v8 }
0x12ea   :  { %2450 = vtanh.f32 %v1211_v6  ;;  %v2030_v14 = vmul.f32 -1.442695, %v1211_v6 }
0x12eb   :  { %2452 = vtanh.f32 %v1215_v9  ;;  %v2031_v15 = vmul.f32 -1.442695, %v1215_v9 }
0x12ec   :  { %2454 = vpow2.f32 %v2030_v14 }
0x12ed   :  { %2456 = vpow2.f32 %v2031_v15 }
0x12f4   :  { %v2451_v12 = vpop.eup %2450 }
0x12f5   :  { %v2453_v13 = vpop.eup %2452  ;;  %1228 = vrot.lane.b32.xlu1 %v2451_v12, %s2553_s5 }
0x12f6   :  { %1255 = vrot.lane.b32.xlu0 %v2453_v13, %s2553_s5  ;;  %v2455_v18 = vpop.eup %2454 }
0x12f7   :  { %v2457_v17 = vpop.eup %2456  ;;  %v1219_v19 = vadd.f32 1.0, %v2455_v18 }
0x12f8   :  { %v1246_v20 = vadd.f32 1.0, %v2457_v17 }
0x12f9   :  { %2458 = vrcp.f32 %v1219_v19 }
0x12fa   :  { %2460 = vrcp.f32 %v1246_v20 }
0x1303   :  { %v2459_v21 = vpop.eup %2458 }
0x1304   :  { %v2461_v22 = vpop.eup %2460  ;;  %v1226_v58 = vmul.f32 %v2459_v21, %v1224_v52 }
0x1305   :  { %v1253_v25 = vmul.f32 %v2461_v22, %v1251_v55 }
0x1367   :  { %v1229_v40 = vpop.permute.xlu1 %1228 }
0x1368   :  { %v1231_v43 = vmul.f32 %v2459_v21, %v1229_v40  ;;  %v1256_v46 = vpop.permute.xlu0 %1255  ;;  %v1443_v40 = vld [vmem:[%s3203_s7] sm:$0xff] }
0x1369   :  { %v1258_v49 = vmul.f32 %v2461_v22, %v1256_v46 }
0x136a   :  { %1233 = vrot.lane.b32.xlu1 %v1231_v43, %s2554_s0  ;;  %v1445_v43 = vld [vmem:[%s3203_s7 + $0x10] sm:$0xff] }
0x136b   :  { %1260 = vrot.lane.b32.xlu0 %v1258_v49, %s2554_s0  ;;  %v1446_v49 = vld [vmem:[%s3203_s7 + $0x18] sm:$0xff] }
0x136c   :  { %v2314_v55 = vpack.c.bf16 %v1446_v49, %v1445_v43 }
0x13dc   :  { %v1234_v24 = vpop.permute.xlu1 %1233 }
0x13dd   :  { %v1236_v26 = vadd.f32 %v1234_v24, %v1226_v58  ;;  %v1261_v28 = vpop.permute.xlu0 %1260  ;;  %v1447_v24 = vld [vmem:[%s3203_s7 + $0x20] sm:$0xff] }
0x13de   :  { %v1263_v30 = vadd.f32 %v1261_v28, %v1253_v25  ;;  %v1448_v25 = vld [vmem:[%s3203_s7 + $0x28] sm:$0xff]  ;;  %v1449_v28 = vld [vmem:[%s3203_s7 + $0x30] sm:$0xff] }
0x13df   :  { %2462 = vtanh.f32 %v1236_v26  ;;  %v1368_v14 = vrot.slane %v1236_v26, 7  ;;  %v2317_v26 = vpack.c.bf16 %v1448_v25, %v1447_v24 }
0x13e0   :  { %2464 = vtanh.f32 %v1263_v30  ;;  %v1395_v13 = vrot.slane %v1263_v30, 1  ;;  %v1450_v30 = vld [vmem:[%s3203_s7 + $0x38] sm:$0xff] }
0x13e9   :  { %v2463_v31 = vpop.eup %2462 }
0x13ea   :  { %v2465_v44 = vpop.eup %2464  ;;  %1239 = vrot.lane.b32.xlu1 %v2463_v31, %s2553_s5  ;;  %v2320_v31 = vpack.c.bf16 %v1450_v30, %v1449_v28 }
0x13eb   :  { %1266 = vrot.lane.b32.xlu0 %v2465_v44, %s2553_s5 }
0x145c   :  { %v1240_v27 = vpop.permute.xlu1 %1239 }
0x145d   :  { %v1242_v33 = vmul.f32 %v2459_v21, %v1240_v27  ;;  %v1267_v34 = vpop.permute.xlu0 %1266 }
0x145e   :  { %v3021_v35 = vmul.f32 %v2461_v22, %v1267_v34  ;;  %v1444_v22 = vld [vmem:[%s3203_s7 + $0x8] sm:$0xff]  ;;  %s2561_s7 = smov 7  }
0x145f   :  { %1271 = vrot.lane.b32.xlu0 %v1242_v33, %s2554_s0  ;;  %v3025_v36 = vsel %vm76_vm1, %v1423_v54, %v1242_v33  ;;  %v2311_v46 = vpack.c.bf16 %v1444_v22, %v1443_v40 }
0x1460   :  { %v1275_v38 = vrot.slane %v3021_v35, 3 }
0x1461   :  { %2312 = vmatpush3.bf16.msra.mxu1 %v2311_v46 }
0x1462   :  { %1276 = vrot.lane.b32.xlu1 %v1275_v38, %s2553_s5  ;;  %2313 = vmatprep.subr.bf16.mxu1 %v2549_v4 }
0x1465   :  { %2315 = vmatpush3.bf16.msra.mxu1 %v2314_v55 }
0x1466   :  { %2316 = vmatprep.subr.bf16.mxu1 %v2549_v4 }
0x1469   :  { %2318 = vmatpush3.bf16.msra.mxu1 %v2317_v26 }
0x146a   :  { %2319 = vmatprep.subr.bf16.mxu1 %v2549_v4 }
0x146d   :  { %2321 = vmatpush3.bf16.msra.mxu1 %v2320_v31 }
0x146e   :  { %2145 = vmatprep.subr.mxu1 %v2550_v11 }
0x14d1   :  { %v1272_v41 = vpop.permute.xlu0 %1271 }
0x14d4   :  { %v1277_v42 = vpop.permute.xlu1 %1276 }
0x14d5   :  { %v1279_v45 = vsel %vm170_vm8, %v1272_v41, %v1277_v42 }
0x14d6   :  { %v1281_v37 = vrot.slane %v1279_v45, 6 }
0x14d8   :  { %2032 = vmatmul.mubr.msk.f32.vlgmr.msra.gmra.mrb[8].mxu0 %vm261_vm9, %v1281_v37  ;;  %v1796_v37 = vld [vmem:[%s3198_s2] sm:$0xff]  ;;  %s2563_s2 = smov [#allocation2]  }
0x14d9   :  { %s1986_s21 = sshll.u32 %s2563_s2, 4  ;;  %s1987_s21 = int_to_ptr.vmem [resolvable:$true] %s1986_s21 }
0x14da   :  { %s2500_s6 = scalar_lea.vmem %s1987_s21, 128  ;;  %p2505_p1 = scmp.lt.s32.totalorder %s1987_s21, %s1987_s21 }
0x14db   :  { %p2501_p0 = scmp.ne.s32.totalorder %s1987_s21, %s2500_s6  ;;  %p2506_p2 = scmp.lt.s32.totalorder %s2500_s6, %s2500_s6 }
0x14dd   :  { %p2507_p3 = por %p2506_p2, %p2505_p1 }
0x14df   :  { %p2508_p4 = pnand %p2507_p3, %p2501_p0 }
0x15ab   :  { %v1350_v47 = vpop.f32.mrb[8].mxu0 }
0x15ac   :  { %v1356_v48 = vrot.slane %v1350_v47, 1  ;;  %v1352_v50 = vpop.f32.mrb[9].mxu0 }
0x15ad   :  { %v1359_v51 = vadd.f32 %v1352_v50, %v2815_v8 }
0x15ae   :  { %v1358_v56 = vadd.f32 %v1356_v48, %v2817_v10 }
0x15af   :  { %2466 = vtanh.f32 %v1359_v51  ;;  %v2034_v59 = vmul.f32 -1.442695, %v1359_v51 }
0x15b0   :  { %2468 = vtanh.f32 %v1358_v56  ;;  %v2033_v60 = vmul.f32 -1.442695, %v1358_v56 }
0x15b1   :  { %2470 = vpow2.f32 %v2034_v59  ;;  %v1622_v59 = vld [vmem:[%s3205_s9 + $0x18] sm:$0xff] }
0x15b2   :  { %2472 = vpow2.f32 %v2033_v60 }
0x15b9   :  { %v2467_v54 = vpop.eup %2466 }
0x15ba   :  { %v2469_v57 = vpop.eup %2468  ;;  %1399 = vrot.lane.b32.xlu0 %v2467_v54, %s2553_s5  ;;  %v1544_v54 = vsub.s32 2, %v2804_v63 }
0x15bb   :  { %1372 = vrot.lane.b32.xlu1 %v2469_v57, %s2553_s5  ;;  %v2471_v61 = vpop.eup %2470  ;;  %v1621_v57 = vld [vmem:[%s3205_s9 + $0x10] sm:$0xff] }
0x15bc   :  { %v2473_v62 = vpop.eup %2472  ;;  %v1390_v1 = vadd.f32 1.0, %v2471_v61  ;;  %v1553_v61 = vsub.s32 3, %v2804_v63 }
0x15bd   :  { %v1363_v3 = vadd.f32 1.0, %v2473_v62 }
0x15be   :  { %2474 = vrcp.f32 %v1390_v1  ;;  %v1562_v1 = vsub.s32 4, %v2804_v63 }
0x15bf   :  { %2476 = vrcp.f32 %v1363_v3 }
0x15c8   :  { %v2475_v8 = vpop.eup %2474 }
0x15c9   :  { %v2477_v5 = vpop.eup %2476  ;;  %v1397_v15 = vmul.f32 %v2475_v8, %v1395_v13 }
0x15ca   :  { %v1370_v17 = vmul.f32 %v2477_v5, %v1368_v14 }
0x162c   :  { %v1400_v10 = vpop.permute.xlu0 %1399 }
0x162d   :  { %v1402_v6 = vmul.f32 %v2475_v8, %v1400_v10  ;;  %v1373_v9 = vpop.permute.xlu1 %1372 }
0x162e   :  { %v1375_v12 = vmul.f32 %v2477_v5, %v1373_v9 }
0x162f   :  { %1404 = vrot.lane.b32.xlu0 %v1402_v6, %s2554_s0  ;;  %v1589_v6 = vsub.s32 7, %v2804_v63 }
0x1630   :  { %1377 = vrot.lane.b32.xlu1 %v1375_v12, %s2554_s0 }
0x16a1   :  { %v1405_v18 = vpop.permute.xlu0 %1404 }
0x16a2   :  { %v1407_v19 = vadd.f32 %v1405_v18, %v1397_v15  ;;  %v1378_v20 = vpop.permute.xlu1 %1377 }
0x16a3   :  { %v1380_v21 = vadd.f32 %v1378_v20, %v1370_v17 }
0x16a4   :  { %2478 = vtanh.f32 %v1407_v19 }
0x16a5   :  { %2480 = vtanh.f32 %v1380_v21 }
0x16ae   :  { %v2479_v52 = vpop.eup %2478 }
0x16af   :  { %v2481_v58 = vpop.eup %2480  ;;  %1410 = vrot.lane.b32.xlu0 %v2479_v52, %s2553_s5 }
0x16b0   :  { %1383 = vrot.lane.b32.xlu1 %v2481_v58, %s2553_s5 }
0x1721   :  { %v1411_v44 = vpop.permute.xlu0 %1410 }
0x1722   :  { %v1413_v27 = vmul.f32 %v2475_v8, %v1411_v44  ;;  %v1384_v33 = vpop.permute.xlu1 %1383  ;;  %v1571_v8 = vsub.s32 5, %v2804_v63 }
0x1723   :  { %v1386_v34 = vmul.f32 %v2477_v5, %v1384_v33 }
0x1724   :  { %v1427_v38 = vsel %vm1414_vm10, %v1413_v27, %v3021_v35 }
0x1725   :  { %v1428_v41 = vsel %vm1416_vm11, %v1427_v38, %v3002_v53  ;;  %v1426_v42 = vsel %vm1425_vm15, %v3025_v36, %v1386_v34 }
0x1726   :  { %v1429_v45 = vsel %vm1418_vm12, %v1428_v41, %v2973_v7  ;;  %1435 = vrot.lane.b32.xlu0 %v1426_v42, %s2554_s0 }
0x1727   :  { %v1430_v47 = vsel %vm1420_vm13, %v1429_v45, %v2937_v16 }
0x1728   :  { %v1431_v35 = vsel %vm1422_vm14, %v1430_v47, %v2902_v23  ;;  %v1619_v23 = vld [vmem:[%s3205_s9] sm:$0xff] }
0x1729   :  { %v1432_v53 = vsel %vm76_vm1, %v1431_v35, %v2866_v29  ;;  %v1620_v29 = vld [vmem:[%s3205_s9 + $0x8] sm:$0xff] }
0x172a   :  { %1798 = vperm.xlu0 %2353, %v1796_v37   ;;  %v1433_v36 = vsel %vm1425_vm15, %v1432_v53, %v2830_v39  ;;  %v2322_v39 = vpack.c.bf16 %v1620_v29, %v1619_v23  ;;  %v1897_v29 = vld [vmem:[%s3207_s11 + $0x18] sm:$0xff] }
0x172b   :  { %1439 = vrot.lane.b32.xlu1 %v1433_v36, %s2553_s5 }
0x172c   :  { %2323 = vmatprep.subr.bf16.mxu0 %v2322_v39 }
0x172d   :  { %2325 = vmatpush3.bf16.msra.mxu0 %v2322_v39 }
0x1798   :  { %v1436_v7 = vpop.permute.xlu0 %1435 }
0x179d   :  { %v1440_v48 = vpop.permute.xlu1 %1439 }
0x179e   :  { %v1442_v50 = vsel %vm170_vm8, %v1436_v7, %v1440_v48  ;;  %v1894_v7 = vld [vmem:[%s3207_s11] sm:$0xff]  ;;  %v1895_v48 = vld [vmem:[%s3207_s11 + $0x8] sm:$0xff] }
0x179f   :  { %2123 = vmatmul.mubr.msk.f32.vlgmr.msra.gmra.mrb[10].mxu1 %vm261_vm9, %v1442_v50  ;;  %v1896_v50 = vld [vmem:[%s3207_s11 + $0x10] sm:$0xff]  ;;  %v2331_v23 = vpack.c.bf16 %v1895_v48, %v1894_v7  ;;  %s2556_s11 = smov 1  }
0x17a0   :  { %2147 = vmatprep.mubr.msk.f32.mxu1 %vm2551_vm0, %v2550_v11  ;;  %v2334_v39 = vpack.c.bf16 %v1897_v29, %v1896_v50 }
0x17a9   :  { %v1799_v14 = vpop.permute.xlu0 %1798 }
0x17aa   :  { %vm1800_vm1 = vcmp.eq.s32.totalorder %v1799_v14, %v2703_v32 }
0x17ab   :  { %v2045_v15 = vsel %vm1800_vm1, 1.0, %v2550_v11 }
0x17ac   :  { %v1804_v18 = vrot.slane %v2045_v15, 1 }
0x1872   :  { %v3096_v16 = vpop.f32.mrb[10].mxu1 }
0x1873   :  { %1806 = vrot.lane.b32.xlu1 %v3096_v16, %s2553_s5  ;;  %v2124_v51 = vpop.f32.mrb[11].mxu1  ;;  %v1527_v56 = vrot.slane %v3096_v16, %v162_v2  ;;  %v1536_v60 = vrot.slane %v3096_v16, %v166_v0  ;;  %v2326_v2 = vpack.c.bf16 %v1622_v59, %v1621_v57  ;;  %v1545_v62 = vrot.slane %v3096_v16, %v1544_v54 }
0x1874   :  { %v1554_v3 = vrot.slane %v3096_v16, %v1553_v61  ;;  %v1563_v10 = vrot.slane %v3096_v16, %v1562_v1  ;;  %v1580_v0 = vsub.s32 6, %v2804_v63  ;;  %v1572_v5 = vrot.slane %v3096_v16, %v1571_v8  ;;  %v2036_v63 = vld [vmem:[%s3204_s8] ss:$0 sm:$0xff] }
0x1875   :  { %1529 = vrot.lane.b32.xlu0 %v1527_v56, %s2555_s26  ;;  %2327 = vmatprep.subr.bf16.mxu0 %v2326_v2  ;;  %v1590_v12 = vrot.slane %v3096_v16, %v1589_v6  ;;  %v1809_v13 = vrot.slane %v3096_v16, 1  ;;  %v2047_v56 = vld [vmem:[%s3206_s10] ss:$0 sm:$0xff]  ;;  %s2560_s10 = smov 4  }
0x1876   :  { %2329 = vmatpush3.bf16.msra.mxu0 %v2326_v2  ;;  %v1581_v9 = vrot.slane %v3096_v16, %v1580_v0 }
0x1877   :  { %1538 = vrot.lane.b32.xlu1 %v1536_v60, %s2555_s26 }
0x1879   :  { %1547 = vrot.lane.b32.xlu0 %v1545_v62, %s2555_s26 }
0x187b   :  { %1556 = vrot.lane.b32.xlu1 %v1554_v3, %s2555_s26 }
0x187d   :  { %1565 = vrot.lane.b32.xlu0 %v1563_v10, %s2555_s26 }
0x187f   :  { %1574 = vrot.lane.b32.xlu1 %v1572_v5, %s2555_s26 }
0x1881   :  { %1583 = vrot.lane.b32.xlu0 %v1581_v9, %s2555_s26 }
0x1883   :  { %1592 = vrot.lane.b32.xlu1 %v1590_v12, %s2555_s26 }
0x1885   :  { %1810 = vrot.lane.b32.xlu0 %v1809_v13, %s2554_s0 }
0x18e5   :  { %v1807_v17 = vpop.permute.xlu1 %1806 }
0x18e6   :  { %2146 = vmatpush3.msra.mxu1 %v1807_v17 }
0x18e7   :  { %2148 = vmatmul.mubr.msk.f32.vlgmr.msra.gmra.mrb[12].mxu1 %vm1794_vm2, %v1804_v18  ;;  %v1530_v19 = vpop.permute.xlu0 %1529  ;;  %2330 = vmatprep.subr.bf16.mxu1 %v2549_v4 }
0x18e8   :  { %v1532_v20 = vadd.f32 %v1530_v19, %v3096_v16  ;;  %2158 = vmatprep.mubr.msk.f32.mxu1 %vm2551_vm0, %v2550_v11  ;;  %2332 = vmatpush3.bf16.msra.mxu1 %v2331_v23  ;;  %vm1780_vm0 = vcmask 7168  }
0x18e9   :  { %v1539_v32 = vpop.permute.xlu1 %1538  ;;  %2333 = vmatprep.subr.bf16.mxu1 %v2549_v4 }
0x18ea   :  { %v1603_v21 = vadd.f32 %v2036_v63, %v1532_v20  ;;  %v1541_v40 = vadd.f32 %v1539_v32, %v3096_v16 }
0x18eb   :  { %v1548_v22 = vpop.permute.xlu0 %1547 }
0x18ec   :  { %2482 = vtanh.f32 %v1603_v21  ;;  %v1604_v43 = vadd.f32 %v2036_v63, %v1541_v40  ;;  %v1550_v46 = vadd.f32 %v1548_v22, %v3096_v16  ;;  %2335 = vmatpush3.bf16.msra.mxu1 %v2334_v39 }
0x18ed   :  { %v1557_v49 = vpop.permute.xlu1 %1556 }
0x18ee   :  { %2484 = vtanh.f32 %v1604_v43  ;;  %v1605_v52 = vadd.f32 %v2036_v63, %v1550_v46  ;;  %v1559_v55 = vadd.f32 %v1557_v49, %v3096_v16 }
0x18ef   :  { %v1566_v58 = vpop.permute.xlu0 %1565 }
0x18f0   :  { %2486 = vtanh.f32 %v1605_v52  ;;  %v1606_v24 = vadd.f32 %v2036_v63, %v1559_v55  ;;  %v1568_v25 = vadd.f32 %v1566_v58, %v3096_v16 }
0x18f1   :  { %v1575_v11 = vpop.permute.xlu1 %1574 }
0x18f2   :  { %2488 = vtanh.f32 %v1606_v24  ;;  %v1607_v26 = vadd.f32 %v2036_v63, %v1568_v25  ;;  %v1577_v28 = vadd.f32 %v1575_v11, %v3096_v16 }
0x18f3   :  { %v1584_v30 = vpop.permute.xlu0 %1583 }
0x18f4   :  { %2490 = vtanh.f32 %v1607_v26  ;;  %v1608_v31 = vadd.f32 %v2036_v63, %v1577_v28  ;;  %v1586_v44 = vadd.f32 %v1584_v30, %v3096_v16 }
0x18f5   :  { %v1593_v27 = vpop.permute.xlu1 %1592 }
0x18f6   :  { %v2483_v33 = vpop.eup %2482  ;;  %2492 = vtanh.f32 %v1608_v31  ;;  %v1609_v34 = vadd.f32 %v2036_v63, %v1586_v44  ;;  %v1595_v38 = vadd.f32 %v1593_v27, %v3096_v16 }
0x18f7   :  { %2133 = vmatprep.mubr.msk.f32.mxu0 %vm170_vm8, %v2483_v33  ;;  %v1811_v16 = vpop.permute.xlu0 %1810 }
0x18f8   :  { %v2485_v41 = vpop.eup %2484  ;;  %2494 = vtanh.f32 %v1609_v34  ;;  %v1610_v42 = vadd.f32 %v2036_v63, %v1595_v38 }
0x18f9   :  { %2134 = vmatmul.mubr.msk.f32.vlgmr.msra.gmra.mrb[10].mxu0 %vm170_vm8, %v2485_v41 }
0x18fa   :  { %v2487_v45 = vpop.eup %2486  ;;  %2496 = vtanh.f32 %v1610_v42 }
0x18fb   :  { %2136 = vmatprep.mubr.msk.f32.mxu0 %vm170_vm8, %v2487_v45 }
0x18fc   :  { %v2489_v37 = vpop.eup %2488 }
0x18fd   :  { %2137 = vmatmul.mubr.msk.f32.gmra.mrb[12].mxu0 %vm170_vm8, %v2489_v37 }
0x18fe   :  { %v2491_v47 = vpop.eup %2490 }
0x18ff   :  { %2139 = vmatprep.mubr.msk.f32.mxu0 %vm170_vm8, %v2491_v47 }
0x1900   :  { %v2493_v35 = vpop.eup %2492 }
0x1901   :  { %2140 = vmatmul.mubr.msk.f32.gmra.mrb[14].mxu0 %vm170_vm8, %v2493_v35 }
0x1902   :  { %v2495_v53 = vpop.eup %2494 }
0x1903   :  { %2142 = vmatprep.mubr.msk.f32.mxu0 %vm170_vm8, %v2495_v53 }
0x1904   :  { %v2497_v36 = vpop.eup %2496 }
0x1905   :  { %2143 = vmatmul.mubr.msk.f32.gmra.mrb[16].mxu0 %vm170_vm8, %v2497_v36 }
0x19ba   :  { %v1881_v51 = vpop.f32.mrb[12].mxu1 }
0x19bb   :  { %v1882_v54 = vadd.f32 %v1881_v51, %v1811_v16  ;;  %v2149_v57 = vpop.f32.mrb[13].mxu1 }
0x19bd   :  { %v1892_v59 = vadd.f32 %v2047_v56, %v1882_v54 }
0x19bf   :  { %2498 = vtanh.f32 %v1892_v59 }
0x19c9   :  { %v2499_v60 = vpop.eup %2498 }
0x19ca   :  { %2159 = vmatmul.mubr.msk.f32.vlgmr.msra.gmra.mrb[14].mxu1 %vm170_vm8, %v2499_v60  ;;  %vm1792_vm8 = vcmask 56320  }
0x19cc   :  { %v2135_v61 = vpop.f32.mrb[10].mxu0 }
0x19cd   :  { %1753 = vrot.lane.b32.xlu1 %v2135_v61, %s2556_s11  ;;  %v1713_v2 = vpop.f32.mrb[11].mxu0 }
0x19d0   :  { %v2138_v62 = vpop.f32.mrb[12].mxu0 }
0x19d1   :  { %1761 = vrot.lane.b32.xlu1 %v2138_v62, %s2557_s18  ;;  %v1723_v4 = vpop.f32.mrb[13].mxu0 }
0x19d2   :  { %1757 = vrot.lane.b32.xlu0 %v1723_v4, %s2558_s19 }
0x19d4   :  { %v2141_v1 = vpop.f32.mrb[14].mxu0 }
0x19d5   :  { %1769 = vrot.lane.b32.xlu1 %v2141_v1, %s2559_s20  ;;  %v1733_v3 = vpop.f32.mrb[15].mxu0 }
0x19d6   :  { %1765 = vrot.lane.b32.xlu0 %v1733_v3, %s2560_s10 }
0x19d8   :  { %v2144_v8 = vpop.f32.mrb[16].mxu0 }
0x19d9   :  { %1777 = vrot.lane.b32.xlu1 %v2144_v8, %s2561_s7  ;;  %v1743_v10 = vpop.f32.mrb[17].mxu0 }
0x19da   :  { %1773 = vrot.lane.b32.xlu0 %v1743_v10, %s2562_s3 }
0x1a3f   :  { %v1754_v0 = vpop.permute.xlu1 %1753 }
0x1a40   :  { %v1781_v6 = vsel %vm1780_vm0, %v1713_v2, %v1754_v0 }
0x1a43   :  { %v1762_v5 = vpop.permute.xlu1 %1761 }
0x1a44   :  { %v1758_v9 = vpop.permute.xlu0 %1757 }
0x1a45   :  { %v1783_v12 = vsel %vm1782_vm3, %v1781_v6, %v1758_v9 }
0x1a46   :  { %v1785_v14 = vsel %vm1784_vm4, %v1783_v12, %v1762_v5 }
0x1a47   :  { %v1770_v13 = vpop.permute.xlu1 %1769 }
0x1a48   :  { %v1766_v15 = vpop.permute.xlu0 %1765 }
0x1a49   :  { %v1787_v18 = vsel %vm1786_vm5, %v1785_v14, %v1766_v15 }
0x1a4a   :  { %v1789_v17 = vsel %vm1788_vm6, %v1787_v18, %v1770_v13 }
0x1a4b   :  { %v1778_v19 = vpop.permute.xlu1 %1777 }
0x1a4c   :  { %v1774_v63 = vpop.permute.xlu0 %1773 }
0x1a4d   :  { %v1791_v20 = vsel %vm1790_vm7, %v1789_v17, %v1774_v63 }
0x1a4e   :  { %v1793_v32 = vsel %vm1792_vm8, %v1791_v20, %v1778_v19 }
0x1a4f   :  { %1795 = vst.msk [vmem:[#allocation2] sm:$0xff] %vm1794_vm2, %v1793_v32 }
0x1a50   :  { %2511 = shalt.err (!%p2508_p4)
}
0x1a51   :  { %s2512_s1 = scalar_lea.hbm %s3209_s13, 128 }
0x1a52   :  { %p2513_p5 = scmp.ne.s32.totalorder %s3209_s13, %s2512_s1  ;;  %p2516_p6 = scmp.lt.u32.totalorder %s2512_s1, %s3209_s13 }
0x1a54   :  { %p2518_p7 = pnand %p2516_p6, %p2513_p5 }
0x1a56   :  { %2521 = shalt.err (!%p2518_p7)
}
0x1a57   :  { %1989 = dma.vmem_to_hbm [thread:$0]  %s1987_s21, 128, %s3209_s13, [#allocation3]   ;;  %v2048_v21 = vld [vmem:[%s3208_s12] ss:$0 sm:$0xff]  ;;  %vm1978_vm9 = vcmask 63488  }
0x1a58   :  { %s2564_s4 = smov [#allocation4]  }
0x1a59   :  { %s1996_s28 = sshll.u32 %s2564_s4, 4  ;;  %s1997_s28 = int_to_ptr.vmem [resolvable:$true] %s1996_s28 }
0x1a5a   :  { %s2522_s29 = scalar_lea.vmem %s1997_s28, 128  ;;  %p2527_p9 = scmp.lt.s32.totalorder %s1997_s28, %s1997_s28 }
0x1a5b   :  { %p2523_p8 = scmp.ne.s32.totalorder %s1997_s28, %s2522_s29  ;;  %p2528_p10 = scmp.lt.s32.totalorder %s2522_s29, %s2522_s29 }
0x1a5d   :  { %p2529_p11 = por %p2528_p10, %p2527_p9 }
0x1a5f   :  { %p2530_p12 = pnand %p2529_p11, %p2523_p8 }
0x1a9d   :  { %v1974_v40 = vpop.f32.mrb[14].mxu1 }
0x1a9e   :  { %v1975_v22 = vadd.f32 %v2048_v21, %v1974_v40  ;;  %v2160_v43 = vpop.f32.mrb[15].mxu1 }
0x1aa0   :  { %1979 = vst.msk [vmem:[#allocation4] sm:$0x7f] %vm1978_vm9, %v1975_v22 }
0x1aa1   :  { %2533 = shalt.err (!%p2530_p12)
}
0x1aa2   :  { %s2534_s15 = scalar_lea.hbm %s3210_s14, 128 }
0x1aa3   :  { %p2535_p13 = scmp.ne.s32.totalorder %s3210_s14, %s2534_s15  ;;  %p2538_p0 = scmp.lt.u32.totalorder %s2534_s15, %s3210_s14 }
0x1aa5   :  { %p2540_p1 = pnand %p2538_p0, %p2535_p13 }
0x1aa7   :  { %2543 = shalt.err (!%p2540_p1)
}
0x1aa8   :  { %1999 = dma.vmem_to_hbm [thread:$0]  %s1997_s28, 128, %s3210_s14, [#allocation5]  }
0x1aa9   :  { %2544 = dma.done.wait [#allocation3], 128  }
0x1aaa   :  { %2545 = vsyncadd [#allocation3], 4294967168 }
0x1aab   :  { %2546 = dma.done.wait [#allocation5], 128  }
0x1aac   :  { %2547 = vsyncadd [#allocation5], 4294967168 }
0x1aad   :  { %2006 = vsyncpa [#allocation3], 1 }
0x1aae   :  { %2007 = vsyncpa [#allocation5], 1 }

</bundles_post_ra>
